<compile_context>
chip_gen: v5e
topology: v5e:2x2
jax: 0.10.0
libtpu: 0.0.40
codegen_flags: <defaults>
</compile_context>

<pallas_src>
import functools

import jax
import jax.numpy as jnp
from jax.experimental import pallas as pl
from jax.experimental.pallas import tpu as pltpu

ALPHA = 2.0
N_SCALES = 8  # the 8 scale branches used in forward


# --------------------------------------------------------------------------- #
# Kernel: 5 dense matmuls + 4 sin's, everything resident in VMEM.
# --------------------------------------------------------------------------- #
def _fused_kernel(x_ref,
                  w1_ref, b1_ref,
                  w2_ref, b2_ref,
                  w3_ref, b3_ref,
                  w4_ref, b4_ref,
                  wt_ref, bt_ref,
                  out_ref,
                  *, split_hidden):
    wide = w2_ref.shape[0]
    half = wide // 2
    # Only split when the halves are lane-dense multiples of 128 (H % 32 == 0).
    do_split = split_hidden and (half % 128 == 0)

    def hidden_layer(h, w_ref, b_ref):
        # bf16 (or f32) MXU operands, f32 accumulate; bias add + sin stay f32
        # (v5e VPU/EUP have no bf16 path).
        hw = h.astype(w_ref.dtype)
        if do_split:
            # v5e path: skip the all-zero off-diagonal 128x128 MXU weight tiles.
            lo = jnp.dot(hw[:, :half], w_ref[:half, :half],
                         preferred_element_type=jnp.float32)
            hi = jnp.dot(hw[:, half:], w_ref[half:, half:],
                         preferred_element_type=jnp.float32)
            z = jnp.concatenate([lo, hi], axis=-1)
        else:
            z = jnp.dot(hw, w_ref[...], preferred_element_type=jnp.float32)
        # TODO(synk): if a bundle dump shows sin lowering to a long VALU
        # polynomial (rather than EUP) and it becomes the binding slot after the
        # bf16 matmuls, compute sin in bf16 on v6e/v7x.
        return jnp.sin(z + b_ref[...])

    x = x_ref[...]                                                       # (TB, D)
    # Layer 1 kept fully f32: the 2**s scale is folded into W1, so the sin
    # argument can be large and bf16 rounding there would be amplified.
    h = jnp.sin(jnp.dot(x, w1_ref[...], preferred_element_type=jnp.float32)
                + b1_ref[...])
    h = hidden_layer(h, w2_ref, b2_ref)
    h = hidden_layer(h, w3_ref, b3_ref)
    h = hidden_layer(h, w4_ref, b4_ref)
    out_ref[...] = (jnp.dot(h.astype(wt_ref.dtype), wt_ref[...],
                            preferred_element_type=jnp.float32)
                    + bt_ref[...])


# --------------------------------------------------------------------------- #
# One-time weight repacking (outside the kernel).
# --------------------------------------------------------------------------- #
def _block_diag(blocks):
    """(S, H, H) per-branch blocks -> (S*H, S*H) block-diagonal matrix."""
    S, H, _ = blocks.shape
    out = jnp.zeros((S * H, S * H), blocks.dtype)
    for s in range(S):
        out = out.at[s * H:(s + 1) * H, s * H:(s + 1) * H].set(blocks[s])
    return out


def pack_params(params, *, use_bf16=True):
    """Repack per-branch params into the 5 fused operands the kernel consumes.

    With use_bf16=True the FLOP-dominant matmul weights (layers 2-4 and the
    fused tail) are stored as bf16 (f32 accumulation happens in the kernel);
    layer 1 and every bias stay f32.
    """
    S = N_SCALES
    D, H = params["w1"].shape[1], params["w1"].shape[2]
    O = params["wpred"].shape[-1]
    mx_dtype = jnp.bfloat16 if use_bf16 else jnp.float32

    # Fold 2**s into layer-1 weights (exact: powers of two), then fuse across scales.
    scales = jnp.asarray([ALPHA ** s for s in range(S)], jnp.float32).reshape(S, 1, 1)
    w1_scaled = params["w1"] * scales                                      # (S, D, H)
    w1_wide = jnp.transpose(w1_scaled, (1, 0, 2)).reshape(D, S * H)        # (D, 8H)
    b1_wide = params["b1"].reshape(1, S * H)

    # Hidden layers 2-4: block-diagonal so each layer is a single matmul.
    w2_bd = _block_diag(params["w2"]).astype(mx_dtype)
    w3_bd = _block_diag(params["w3"]).astype(mx_dtype)
    w4_bd = _block_diag(params["w4"]).astype(mx_dtype)
    b2_wide = params["b2"].reshape(1, S * H)
    b3_wide = params["b3"].reshape(1, S * H)
    b4_wide = params["b4"].reshape(1, S * H)

    # Fused branch-head + concat + final predict.
    #   W_tail[s*H:(s+1)*H, :] = wp[s] @ wpred[s]        (H, 1) @ (1, O)
    #   bias_eff = bpred + sum_s bp[s] * wpred[s]
    # NOTE: O is tiny (=2) in production, so the masked partial store on the
    # output lanes is negligible; if O grows, pad W_tail/bias_eff to a multiple
    # of 128 lanes here and slice outside the kernel.
    w_tail = jnp.einsum("shi,sio->sho", params["wp"],
                        params["wpred"]).reshape(S * H, O).astype(mx_dtype)
    bias_eff = params["bpred"] + jnp.sum(
        params["bp"][:, 0, :] * params["wpred"][:, 0, :], axis=0, keepdims=True)  # (1, O)

    return {
        "w1": w1_wide, "b1": b1_wide,
        "w2": w2_bd, "b2": b2_wide,
        "w3": w3_bd, "b3": b3_wide,
        "w4": w4_bd, "b4": b4_wide,
        "wt": w_tail, "bt": bias_eff,
    }


def _is_v5e():
    """Best-effort detection of a v5e (128-wide MXU) backend."""
    try:
        kind = jax.devices()[0].device_kind.lower()
    except Exception:  # pragma: no cover - detection is best-effort only
        return False
    return ("v5e" in kind) or ("v5 lite" in kind) or ("v5lite" in kind)


# --------------------------------------------------------------------------- #
# Wrapper: batch-tiled pallas_call (weights resident, batch axis parallel).
# --------------------------------------------------------------------------- #
def multiscale_net(x, packed, *, tile_b=2048, vmem_limit_bytes=48 * 1024 * 1024,
                   split_hidden=None):
    """Run the fused MultiScaleNet forward.

    tile_b: batch rows per grid step (2048 default; 4096 is also fine on
            v5e/v6e's 128 MiB VMEM — re-derive against 64 MiB before raising
            it on v7x).
    """
    B, D = x.shape
    wide = packed["w1"].shape[-1]          # 8 * H
    O = packed["wt"].shape[-1]

    if split_hidden is None:
        split_hidden = _is_v5e()

    # Big tiles amortize the ~0.35 us per-grid-step overhead.
    tb = min(tile_b, B)
    # v7x has 2 TensorCores; the "parallel" grid axis is what shards rows across
    # them, so keep at least 2 tiles whenever the batch is big enough for that
    # to matter (an extra grid step is noise on 1-TC chips).
    if B >= 64 and pl.cdiv(B, tb) < 2:
        tb = max(8, ((pl.cdiv(B, 2) + 7) // 8) * 8)
    n_tiles = pl.cdiv(B, tb)
    # No jnp.pad: Pallas masks the ragged last tile's output stores itself, so
    # we never materialize a padded copy of x in HBM.

    def row_map(i):
        return (i, 0)

    def const_map(i):
        return (0, 0)

    # NOTE: the constant-index weight specs could be single-buffered
    # (pipeline_mode=pl.Buffered(1)) to reclaim ~0.8 MB of dead second-buffer
    # VMEM; left default-buffered since the budget at tile_b=2048 has ample
    # headroom even against v7x's 64 MiB.
    in_specs = [
        pl.BlockSpec((tb, D), row_map),                 # x: tiled over batch
        pl.BlockSpec((D, wide), const_map),             # W1_wide (f32)
        pl.BlockSpec((1, wide), const_map),             # b1_wide
        pl.BlockSpec((wide, wide), const_map),          # W2 block-diag (bf16)
        pl.BlockSpec((1, wide), const_map),             # b2
        pl.BlockSpec((wide, wide), const_map),          # W3 block-diag (bf16)
        pl.BlockSpec((1, wide), const_map),             # b3
        pl.BlockSpec((wide, wide), const_map),          # W4 block-diag (bf16)
        pl.BlockSpec((1, wide), const_map),             # b4
        pl.BlockSpec((wide, O), const_map),             # W_tail (bf16)
        pl.BlockSpec((1, O), const_map),                # bias_eff
    ]
    out_spec = pl.BlockSpec((tb, O), row_map)

    weight_bytes = sum(int(v.size) * v.dtype.itemsize for v in packed.values())
    cost = pl.CostEstimate(
        flops=int(2 * B * (D * wide + 3 * wide * wide + wide * O)),
        transcendentals=int(4 * B * wide),
        bytes_accessed=int(4 * B * (D + O) + weight_bytes),
    )

    out = pl.pallas_call(
        functools.partial(_fused_kernel, split_hidden=split_hidden),
        out_shape=jax.ShapeDtypeStruct((B, O), jnp.float32),
        grid=(n_tiles,),
        in_specs=in_specs,
        out_specs=out_spec,
        compiler_params=pltpu.CompilerParams(
            dimension_semantics=("parallel",),
            vmem_limit_bytes=vmem_limit_bytes),
        cost_estimate=cost,
    )(x,
      packed["w1"], packed["b1"],
      packed["w2"], packed["b2"],
      packed["w3"], packed["b3"],
      packed["w4"], packed["b4"],
      packed["wt"], packed["bt"])

    return out


# --------------------------------------------------------------------------- #
# Deterministic synthetic parameters (shapes match the PyTorch module).
# --------------------------------------------------------------------------- #
def init_params(key, input_dim, output_dim, hidden_size):
    ks = jax.random.split(key, 13)
    S, D, H, O = N_SCALES, input_dim, hidden_size, output_dim

    def u(k, shape, fan_in):
        bound = 1.0 / jnp.sqrt(jnp.float32(fan_in))
        return jax.random.uniform(k, shape, jnp.float32, -bound, bound)

    return {
        # Per-scale FullyConnectedNet parameters, stacked on axis 0.
        # Weights are (S, in, out); biases (S, 1, out).
        "w1": u(ks[0], (S, D, H), D), "b1": u(ks[1], (S, 1, H), D),
        "w2": u(ks[2], (S, H, H), H), "b2": u(ks[3], (S, 1, H), H),
        "w3": u(ks[4], (S, H, H), H), "b3": u(ks[5], (S, 1, H), H),
        "w4": u(ks[6], (S, H, H), H), "b4": u(ks[7], (S, 1, H), H),
        "wp": u(ks[8], (S, H, 1), H), "bp": u(ks[9], (S, 1, 1), H),
        # Final predict: Linear(8, output_dim), stored transposed as (S, 1, O).
        "wpred": u(ks[10], (S, 1, O), S),
        "bpred": u(ks[11], (1, O), S),
    }


# --------------------------------------------------------------------------- #
# Pure-JAX reference mirroring the PyTorch forward (per-branch, unfused).
# --------------------------------------------------------------------------- #
def multiscale_net_ref(x, params):
    ys = []
    for s in range(N_SCALES):
        xs = (ALPHA ** s) * x
        h = jnp.sin(xs @ params["w1"][s] + params["b1"][s])
        h = jnp.sin(h @ params["w2"][s] + params["b2"][s])
        h = jnp.sin(h @ params["w3"][s] + params["b3"][s])
        h = jnp.sin(h @ params["w4"][s] + params["b4"][s])
        ys.append(h @ params["wp"][s] + params["bp"][s])          # (B, 1)
    cat = jnp.concatenate(ys, axis=1)                              # (B, 8)
    wpred = params["wpred"][:, 0, :]                               # (8, O)
    return cat @ wpred + params["bpred"]                           # (B, O)


if __name__ == "__main__":
    key = jax.random.PRNGKey(0)
    k_x, k_p = jax.random.split(key)

    B, D_IN, H, O = 8, 4, 32, 2
    x = jax.random.normal(k_x, (B, D_IN), dtype=jnp.float32)
    params = init_params(k_p, D_IN, O, H)

    ref = jax.block_until_ready(multiscale_net_ref(x, params))

    # 1) f32 weights: bit-for-bit-ish exactness check against the reference.
    packed_f32 = jax.tree_util.tree_map(jax.block_until_ready,
                                        pack_params(params, use_bf16=False))
    out_f32 = jax.block_until_ready(multiscale_net(x, packed_f32))
    assert out_f32.shape == (B, O), out_f32.shape
    assert jnp.allclose(out_f32, ref, atol=1e-5, rtol=1e-5), (out_f32, ref)

    # 2) bf16 MXU operands (the production / fast configuration): looser tolerance.
    packed_bf16 = jax.tree_util.tree_map(jax.block_until_ready,
                                         pack_params(params, use_bf16=True))
    out_bf16 = jax.block_until_ready(multiscale_net(x, packed_bf16))
    assert out_bf16.shape == (B, O), out_bf16.shape
    assert jnp.allclose(out_bf16, ref, atol=3e-2, rtol=3e-2), (out_bf16, ref)

    print("KERNEL_OK")
</pallas_src>

<mosaic_0001>
module attributes {stable_mosaic.version = 11 : i64} {
  func.func @_fused_kernel(%arg0: i32, %arg1: memref<8x4xf32, #tpu.memory_space<vmem>>, %arg2: memref<4x256xf32, #tpu.memory_space<vmem>>, %arg3: memref<1x256xf32, #tpu.memory_space<vmem>>, %arg4: memref<256x256xf32, #tpu.memory_space<vmem>>, %arg5: memref<1x256xf32, #tpu.memory_space<vmem>>, %arg6: memref<256x256xf32, #tpu.memory_space<vmem>>, %arg7: memref<1x256xf32, #tpu.memory_space<vmem>>, %arg8: memref<256x256xf32, #tpu.memory_space<vmem>>, %arg9: memref<1x256xf32, #tpu.memory_space<vmem>>, %arg10: memref<256x2xf32, #tpu.memory_space<vmem>>, %arg11: memref<1x2xf32, #tpu.memory_space<vmem>>, %arg12: memref<8x2xf32, #tpu.memory_space<vmem>>) attributes {dimension_semantics = [#tpu.dimension_semantics<parallel>], iteration_bounds = array<i64: 1>, scalar_prefetch = 0 : i64, scratch_operands = 0 : i64, tpu.core_type = #tpu.core_type<tc>, window_params = [{transform_indices = @transform_0, window_bounds = array<i64: 8, 4>}, {pipeline_mode = #tpu.pipeline_mode<synchronous>, transform_indices = @transform_1, window_bounds = array<i64: 4, 256>}, {pipeline_mode = #tpu.pipeline_mode<synchronous>, transform_indices = @transform_2, window_bounds = array<i64: 1, 256>}, {pipeline_mode = #tpu.pipeline_mode<synchronous>, transform_indices = @transform_3, window_bounds = array<i64: 256, 256>}, {pipeline_mode = #tpu.pipeline_mode<synchronous>, transform_indices = @transform_4, window_bounds = array<i64: 1, 256>}, {pipeline_mode = #tpu.pipeline_mode<synchronous>, transform_indices = @transform_5, window_bounds = array<i64: 256, 256>}, {pipeline_mode = #tpu.pipeline_mode<synchronous>, transform_indices = @transform_6, window_bounds = array<i64: 1, 256>}, {pipeline_mode = #tpu.pipeline_mode<synchronous>, transform_indices = @transform_7, window_bounds = array<i64: 256, 256>}, {pipeline_mode = #tpu.pipeline_mode<synchronous>, transform_indices = @transform_8, window_bounds = array<i64: 1, 256>}, {pipeline_mode = #tpu.pipeline_mode<synchronous>, transform_indices = @transform_9, window_bounds = array<i64: 256, 2>}, {pipeline_mode = #tpu.pipeline_mode<synchronous>, transform_indices = @transform_10, window_bounds = array<i64: 1, 2>}, {transform_indices = @transform_11, window_bounds = array<i64: 8, 2>}]} {
    %c0 = arith.constant 0 : index
    %c0_0 = arith.constant 0 : index
    %0 = vector.load %arg1[%c0, %c0_0] : memref<8x4xf32, #tpu.memory_space<vmem>>, vector<8x4xf32>
    %c0_1 = arith.constant 0 : index
    %c0_2 = arith.constant 0 : index
    %1 = vector.load %arg2[%c0_1, %c0_2] : memref<4x256xf32, #tpu.memory_space<vmem>>, vector<4x256xf32>
    %cst = arith.constant dense<0.000000e+00> : vector<8x256xf32>
    %2 = tpu.matmul %0, %1, %cst {dimension_numbers = #tpu.dot_dimension_numbers<[1], [0], [0], [1], [0, 0, 1, 1], [], []>} : vector<8x4xf32>, vector<4x256xf32>, vector<8x256xf32> -> vector<8x256xf32>
    %c0_3 = arith.constant 0 : index
    %c0_4 = arith.constant 0 : index
    %3 = vector.load %arg3[%c0_3, %c0_4] : memref<1x256xf32, #tpu.memory_space<vmem>>, vector<1x256xf32>
    %4 = vector.broadcast %3 : vector<1x256xf32> to vector<8x256xf32>
    %5 = arith.addf %2, %4 : vector<8x256xf32>
    %6 = math.sin %5 : vector<8x256xf32>
    %c0_5 = arith.constant 0 : index
    %c0_6 = arith.constant 0 : index
    %7 = vector.load %arg4[%c0_5, %c0_6] : memref<256x256xf32, #tpu.memory_space<vmem>>, vector<256x256xf32>
    %cst_7 = arith.constant dense<0.000000e+00> : vector<8x256xf32>
    %8 = tpu.matmul %6, %7, %cst_7 {dimension_numbers = #tpu.dot_dimension_numbers<[1], [0], [0], [1], [0, 0, 1, 1], [], []>} : vector<8x256xf32>, vector<256x256xf32>, vector<8x256xf32> -> vector<8x256xf32>
    %c0_8 = arith.constant 0 : index
    %c0_9 = arith.constant 0 : index
    %9 = vector.load %arg5[%c0_8, %c0_9] : memref<1x256xf32, #tpu.memory_space<vmem>>, vector<1x256xf32>
    %10 = vector.broadcast %9 : vector<1x256xf32> to vector<8x256xf32>
    %11 = arith.addf %8, %10 : vector<8x256xf32>
    %12 = math.sin %11 : vector<8x256xf32>
    %c0_10 = arith.constant 0 : index
    %c0_11 = arith.constant 0 : index
    %13 = vector.load %arg6[%c0_10, %c0_11] : memref<256x256xf32, #tpu.memory_space<vmem>>, vector<256x256xf32>
    %cst_12 = arith.constant dense<0.000000e+00> : vector<8x256xf32>
    %14 = tpu.matmul %12, %13, %cst_12 {dimension_numbers = #tpu.dot_dimension_numbers<[1], [0], [0], [1], [0, 0, 1, 1], [], []>} : vector<8x256xf32>, vector<256x256xf32>, vector<8x256xf32> -> vector<8x256xf32>
    %c0_13 = arith.constant 0 : index
    %c0_14 = arith.constant 0 : index
    %15 = vector.load %arg7[%c0_13, %c0_14] : memref<1x256xf32, #tpu.memory_space<vmem>>, vector<1x256xf32>
    %16 = vector.broadcast %15 : vector<1x256xf32> to vector<8x256xf32>
    %17 = arith.addf %14, %16 : vector<8x256xf32>
    %18 = math.sin %17 : vector<8x256xf32>
    %c0_15 = arith.constant 0 : index
    %c0_16 = arith.constant 0 : index
    %19 = vector.load %arg8[%c0_15, %c0_16] : memref<256x256xf32, #tpu.memory_space<vmem>>, vector<256x256xf32>
    %cst_17 = arith.constant dense<0.000000e+00> : vector<8x256xf32>
    %20 = tpu.matmul %18, %19, %cst_17 {dimension_numbers = #tpu.dot_dimension_numbers<[1], [0], [0], [1], [0, 0, 1, 1], [], []>} : vector<8x256xf32>, vector<256x256xf32>, vector<8x256xf32> -> vector<8x256xf32>
    %c0_18 = arith.constant 0 : index
    %c0_19 = arith.constant 0 : index
    %21 = vector.load %arg9[%c0_18, %c0_19] : memref<1x256xf32, #tpu.memory_space<vmem>>, vector<1x256xf32>
    %22 = vector.broadcast %21 : vector<1x256xf32> to vector<8x256xf32>
    %23 = arith.addf %20, %22 : vector<8x256xf32>
    %24 = math.sin %23 : vector<8x256xf32>
    %c0_20 = arith.constant 0 : index
    %c0_21 = arith.constant 0 : index
    %25 = vector.load %arg10[%c0_20, %c0_21] : memref<256x2xf32, #tpu.memory_space<vmem>>, vector<256x2xf32>
    %cst_22 = arith.constant dense<0.000000e+00> : vector<8x2xf32>
    %26 = tpu.matmul %24, %25, %cst_22 {dimension_numbers = #tpu.dot_dimension_numbers<[1], [0], [0], [1], [0, 0, 1, 1], [], []>} : vector<8x256xf32>, vector<256x2xf32>, vector<8x2xf32> -> vector<8x2xf32>
    %c0_23 = arith.constant 0 : index
    %c0_24 = arith.constant 0 : index
    %27 = vector.load %arg11[%c0_23, %c0_24] : memref<1x2xf32, #tpu.memory_space<vmem>>, vector<1x2xf32>
    %28 = vector.broadcast %27 : vector<1x2xf32> to vector<8x2xf32>
    %29 = arith.addf %26, %28 : vector<8x2xf32>
    %c0_25 = arith.constant 0 : index
    %c0_26 = arith.constant 0 : index
    %30 = vector.load %arg12[%c0_25, %c0_26] : memref<8x2xf32, #tpu.memory_space<vmem>>, vector<8x2xf32>
    tpu.vector_store %arg12[%c0_25, %c0_26], %29 {strides = array<i32>} : memref<8x2xf32, #tpu.memory_space<vmem>>, vector<8x2xf32>,
    return
  }
  func.func @transform_0(%arg0: i32) -> (i32, i32) {
    %c0_i32 = arith.constant 0 : i32
    %c0_i32_0 = arith.constant 0 : i32
    return %arg0, %c0_i32 : i32, i32
  }
  func.func @transform_1(%arg0: i32) -> (i32, i32) {
    %c0_i32 = arith.constant 0 : i32
    %c0_i32_0 = arith.constant 0 : i32
    %c0_i32_1 = arith.constant 0 : i32
    return %c0_i32, %c0_i32_0 : i32, i32
  }
  func.func @transform_2(%arg0: i32) -> (i32, i32) {
    %c0_i32 = arith.constant 0 : i32
    %c0_i32_0 = arith.constant 0 : i32
    %c0_i32_1 = arith.constant 0 : i32
    return %c0_i32, %c0_i32_0 : i32, i32
  }
  func.func @transform_3(%arg0: i32) -> (i32, i32) {
    %c0_i32 = arith.constant 0 : i32
    %c0_i32_0 = arith.constant 0 : i32
    %c0_i32_1 = arith.constant 0 : i32
    return %c0_i32, %c0_i32_0 : i32, i32
  }
  func.func @transform_4(%arg0: i32) -> (i32, i32) {
    %c0_i32 = arith.constant 0 : i32
    %c0_i32_0 = arith.constant 0 : i32
    %c0_i32_1 = arith.constant 0 : i32
    return %c0_i32, %c0_i32_0 : i32, i32
  }
  func.func @transform_5(%arg0: i32) -> (i32, i32) {
    %c0_i32 = arith.constant 0 : i32
    %c0_i32_0 = arith.constant 0 : i32
    %c0_i32_1 = arith.constant 0 : i32
    return %c0_i32, %c0_i32_0 : i32, i32
  }
  func.func @transform_6(%arg0: i32) -> (i32, i32) {
    %c0_i32 = arith.constant 0 : i32
    %c0_i32_0 = arith.constant 0 : i32
    %c0_i32_1 = arith.constant 0 : i32
    return %c0_i32, %c0_i32_0 : i32, i32
  }
  func.func @transform_7(%arg0: i32) -> (i32, i32) {
    %c0_i32 = arith.constant 0 : i32
    %c0_i32_0 = arith.constant 0 : i32
    %c0_i32_1 = arith.constant 0 : i32
    return %c0_i32, %c0_i32_0 : i32, i32
  }
  func.func @transform_8(%arg0: i32) -> (i32, i32) {
    %c0_i32 = arith.constant 0 : i32
    %c0_i32_0 = arith.constant 0 : i32
    %c0_i32_1 = arith.constant 0 : i32
    return %c0_i32, %c0_i32_0 : i32, i32
  }
  func.func @transform_9(%arg0: i32) -> (i32, i32) {
    %c0_i32 = arith.constant 0 : i32
    %c0_i32_0 = arith.constant 0 : i32
    %c0_i32_1 = arith.constant 0 : i32
    return %c0_i32, %c0_i32_0 : i32, i32
  }
  func.func @transform_10(%arg0: i32) -> (i32, i32) {
    %c0_i32 = arith.constant 0 : i32
    %c0_i32_0 = arith.constant 0 : i32
    %c0_i32_1 = arith.constant 0 : i32
    return %c0_i32, %c0_i32_0 : i32, i32
  }
  func.func @transform_11(%arg0: i32) -> (i32, i32) {
    %c0_i32 = arith.constant 0 : i32
    %c0_i32_0 = arith.constant 0 : i32
    return %arg0, %c0_i32 : i32, i32
  }
}

</mosaic_0001>

<bundles_post_ra>
// kernel: tpu_custom_call.1
= control target key start
LH: loop header
LB: loop body
LE: loop exit
PB: predicated region body
PF: predicated region fallthrough
CT: control target
= control target key end

     0   :  { %16 = vsyncpa [#allocation3], 0  ;;  %s3065_s0 = inlined_call_operand.vmem [shape: f32[8,4], index: 0, kind: input, shape index: {}]   ;;  %s3066_s1 = inlined_call_operand.vmem [shape: f32[4,256], index: 1, kind: input, shape index: {}]   ;;  %s3067_s2 = inlined_call_operand.vmem [shape: f32[1,256], index: 2, kind: input, shape index: {}]   ;;  %s3068_s3 = inlined_call_operand.hbm [shape: f32[256,256], index: 3, kind: input, shape index: {}]   ;;  %s3069_s4 = inlined_call_operand.vmem [shape: f32[1,256], index: 4, kind: input, shape index: {}]   ;;  %s3070_s5 = inlined_call_operand.hbm [shape: f32[256,256], index: 5, kind: input, shape index: {}]   ;;  %s3071_s6 = inlined_call_operand.vmem [shape: f32[1,256], index: 6, kind: input, shape index: {}]   ;;  %s3072_s7 = inlined_call_operand.hbm [shape: f32[256,256], index: 7, kind: input, shape index: {}]   ;;  %s3073_s8 = inlined_call_operand.vmem [shape: f32[1,256], index: 8, kind: input, shape index: {}]   ;;  %s3074_s9 = inlined_call_operand.vmem [shape: f32[256,2], index: 9, kind: input, shape index: {}]   ;;  %s3075_s10 = inlined_call_operand.vmem [shape: f32[1,2], index: 10, kind: input, shape index: {}]   ;;  %s3076_s11 = inlined_call_operand.vmem [shape: f32[8,2], index: 11, kind: output, shape index: {}]  }
   0x1   :  { %17 = vsyncpa [#allocation5], 0  ;;  %s43_s19 = sshll.u32 %s3070_s5, 4  ;;  %s2037_s20 = smov [#allocation4]   ;;  %s44_s19 = int_to_ptr.hbm [resolvable:$true] %s43_s19 }
   0x2   :  { %s45_s21 = sshll.u32 %s2037_s20, 4  ;;  %s28_s24 = sshll.u32 %s3068_s3, 4  ;;  %s46_s21 = int_to_ptr.vmem [resolvable:$true] %s45_s21  ;;  %s29_s24 = int_to_ptr.hbm [resolvable:$true] %s28_s24 }
   0x3   :  { %s2038_s25 = smov 256   ;;  %s2039_s26 = smov 16  }
   0x4   :  { %51 = dma.hbm_to_vmem [thread:$0]  %s44_s19, 8192, %s46_s21, [#allocation5], %s2038_s25, %s2038_s25, %s2039_s26  }
   0x5   :  { %s2040_s27 = smov [#allocation2]   ;;  %s58_s12 = sshll.u32 %s3072_s7, 4  ;;  %s59_s12 = int_to_ptr.hbm [resolvable:$true] %s58_s12 }
   0x6   :  { %s30_s28 = sshll.u32 %s2040_s27, 4  ;;  %s2041_s5 = smov [#allocation6]   ;;  %s31_s28 = int_to_ptr.vmem [resolvable:$true] %s30_s28 }
   0x7   :  { %36 = dma.hbm_to_vmem [thread:$0]  %s29_s24, 8192, %s31_s28, [#allocation3], %s2038_s25, %s2038_s25, %s2039_s26  }
   0x8   :  { %s60_s13 = sshll.u32 %s2041_s5, 4  ;;  %s61_s13 = int_to_ptr.vmem [resolvable:$true] %s60_s13 }
   0x9   :  { %66 = dma.hbm_to_vmem [thread:$0]  %s59_s12, 8192, %s61_s13, [#allocation5], %s2038_s25, %s2038_s25, %s2039_s26  }
   0xa   :  { %2033 = dma.done.wait [#allocation3], 8192  }
   0xb   :  { %2034 = vsyncadd [#allocation3], 4294959104 }
   0xc   :  { %2035 = dma.done.wait [#allocation5], 16384  }
   0xd   :  { %2036 = vsyncadd [#allocation5], 4294950912  ;;  %v86_v0 = vld [vmem:[%s3066_s1] sm:$0xff]  ;;  %vm101_vm0 = vcmask 1043456   ;;  %vm97_vm1 = vcmask 31744   ;;  %v486_v4 = vld [vmem:[#allocation2 + $0xf0] sm:$0xff] }
   0xe   :  { %94 = vst [vmem:[#allocation1] ss:$2 sm:$0xff] %v86_v0  ;;  %v85_v1 = vld [vmem:[%s3065_s0] sm:$0xff]  ;;  %v518_v5 = vld [vmem:[#allocation2 + $0x1f0] sm:$0xff]  ;;  %526 = vmatpush.msra.mxu2 %v486_v4  ;;  %v484_v8 = vld [vmem:[#allocation2 + $0xe0] sm:$0xff] }
   0xf   :  { %v487_v6 = vld [vmem:[#allocation2 + $0xf8] sm:$0xff]  ;;  %546 = vmatpush.msra.mxu3 %v518_v5  ;;  %v516_v9 = vld [vmem:[#allocation2 + $0x1e0] sm:$0xff]  ;;  %v485_v10 = vld [vmem:[#allocation2 + $0xe8] sm:$0xff] }
  0x10   :  { %v519_v7 = vld [vmem:[#allocation2 + $0x1f8] sm:$0xff]  ;;  %v517_v11 = vld [vmem:[#allocation2 + $0x1e8] sm:$0xff]  ;;  %v482_v12 = vld [vmem:[#allocation2 + $0xd0] sm:$0xff]  ;;  %527 = vmatpush.msra.mxu2 %v484_v8 }
  0x11   :  { %547 = vmatpush.msra.mxu3 %v516_v9  ;;  %v514_v13 = vld [vmem:[#allocation2 + $0x1d0] sm:$0xff]  ;;  %v483_v14 = vld [vmem:[#allocation2 + $0xd8] sm:$0xff]  ;;  %v480_v17 = vld [vmem:[#allocation2 + $0xc0] sm:$0xff] }
  0x12   :  { %v515_v15 = vld [vmem:[#allocation2 + $0x1d8] sm:$0xff]  ;;  %v512_v18 = vld [vmem:[#allocation2 + $0x1c0] sm:$0xff]  ;;  %528 = vmatpush.msra.mxu2 %v482_v12  ;;  %v481_v19 = vld [vmem:[#allocation2 + $0xc8] sm:$0xff] }
  0x13   :  { %v87_v16 = vld [vmem:[%s3067_s2] sm:$0x3]  ;;  %548 = vmatpush.msra.mxu3 %v514_v13  ;;  %v513_v20 = vld [vmem:[#allocation2 + $0x1c8] sm:$0xff]  ;;  %v478_v21 = vld [vmem:[#allocation2 + $0xb0] sm:$0xff] }
  0x14   :  { %v510_v22 = vld [vmem:[#allocation2 + $0x1b0] sm:$0xff]  ;;  %v89_v23 = vperm.slane %v87_v16, 0  ;;  %v90_v24 = vperm.slane %v87_v16, 1  ;;  %529 = vmatpush.msra.mxu2 %v480_v17  ;;  %v479_v25 = vld [vmem:[#allocation2 + $0xb8] sm:$0xff]  ;;  %v476_v27 = vld [vmem:[#allocation2 + $0xa0] sm:$0xff] }
  0x15   :  { %v95_v2 = vld.sshfl [vmem:[#allocation1] sm:$0xff pattern:$0x75316420]  ;;  %v96_v3 = vld.sshfl [vmem:[#allocation1 + $0x8] sm:$0xff pattern:$0x75316420]  ;;  %549 = vmatpush.msra.mxu3 %v512_v18 }
  0x16   :  { %1920 = vmatpush.msk.msra.mxu0 %vm101_vm0, %v95_v2  ;;  %1922 = vmatpush.msk.msra.mxu1 %vm101_vm0, %v96_v3  ;;  %v511_v26 = vld [vmem:[#allocation2 + $0x1b8] sm:$0xff]  ;;  %v508_v28 = vld [vmem:[#allocation2 + $0x1a0] sm:$0xff]  ;;  %v477_v29 = vld [vmem:[#allocation2 + $0xa8] sm:$0xff] }
  0x17   :  { %1921 = vmatmul.msk.f32.vlgmr.msra.gmra.mxu0 %vm97_vm1, %v85_v1  ;;  %1923 = vmatmul.msk.f32.vlgmr.msra.gmra.mxu1 %vm97_vm1, %v85_v1  ;;  %v509_v30 = vld [vmem:[#allocation2 + $0x1a8] sm:$0xff]  ;;  %v474_v33 = vld [vmem:[#allocation2 + $0x90] sm:$0xff]  ;;  %v475_v37 = vld [vmem:[#allocation2 + $0x98] sm:$0xff] }
  0x18   :  { %566 = vmatpush.msrb.mxu0 %v487_v6  ;;  %586 = vmatpush.msrb.mxu1 %v519_v7  ;;  %v506_v34 = vld [vmem:[#allocation2 + $0x190] sm:$0xff]  ;;  %v507_v38 = vld [vmem:[#allocation2 + $0x198] sm:$0xff]  ;;  %v472_v39 = vld [vmem:[#allocation2 + $0x80] sm:$0xff] }
  0x19   :  { %530 = vmatpush.msra.mxu2 %v478_v21  ;;  %550 = vmatpush.msra.mxu3 %v510_v22  ;;  %v504_v40 = vld [vmem:[#allocation2 + $0x180] sm:$0xff]  ;;  %v473_v43 = vld [vmem:[#allocation2 + $0x88] sm:$0xff]  ;;  %v470_v45 = vld [vmem:[#allocation2 + $0x70] sm:$0xff]  ;;  %v2042_v22 = vmov 2102212464  }
  0x1a   :  { %567 = vmatpush.msrb.mxu0 %v485_v10  ;;  %587 = vmatpush.msrb.mxu1 %v517_v11  ;;  %v505_v44 = vld [vmem:[#allocation2 + $0x188] sm:$0xff]  ;;  %v502_v46 = vld [vmem:[#allocation2 + $0x170] sm:$0xff]  ;;  %v471_v50 = vld [vmem:[#allocation2 + $0x78] sm:$0xff] }
  0x1b   :  { %531 = vmatpush.msra.mxu2 %v476_v27  ;;  %551 = vmatpush.msra.mxu3 %v508_v28  ;;  %v503_v51 = vld [vmem:[#allocation2 + $0x178] sm:$0xff]  ;;  %v468_v52 = vld [vmem:[#allocation2 + $0x60] sm:$0xff]  ;;  %v469_v56 = vld [vmem:[#allocation2 + $0x68] sm:$0xff]  ;;  %v2043_v28 = vmov 920167782  }
  0x1c   :  { %568 = vmatpush.msrb.mxu0 %v483_v14  ;;  %588 = vmatpush.msrb.mxu1 %v515_v15  ;;  %v500_v53 = vld [vmem:[#allocation2 + $0x160] sm:$0xff]  ;;  %v501_v57 = vld [vmem:[#allocation2 + $0x168] sm:$0xff]  ;;  %v466_v58 = vld [vmem:[#allocation2 + $0x50] sm:$0xff] }
  0x1d   :  { %532 = vmatpush.msra.mxu2 %v474_v33  ;;  %552 = vmatpush.msra.mxu3 %v506_v34  ;;  %v498_v59 = vld [vmem:[#allocation2 + $0x150] sm:$0xff]  ;;  %v467_v63 = vld [vmem:[#allocation2 + $0x58] sm:$0xff]  ;;  %v464_v1 = vld [vmem:[#allocation2 + $0x40] sm:$0xff] }
  0x1e   :  { %569 = vmatpush.msrb.mxu0 %v481_v19  ;;  %589 = vmatpush.msrb.mxu1 %v513_v20  ;;  %v499_v0 = vld [vmem:[#allocation2 + $0x158] sm:$0xff]  ;;  %v496_v2 = vld [vmem:[#allocation2 + $0x140] sm:$0xff]  ;;  %v465_v4 = vld [vmem:[#allocation2 + $0x48] sm:$0xff] }
  0x1f   :  { %533 = vmatpush.msra.mxu2 %v472_v39  ;;  %553 = vmatpush.msra.mxu3 %v504_v40  ;;  %v497_v5 = vld [vmem:[#allocation2 + $0x148] sm:$0xff]  ;;  %v462_v8 = vld [vmem:[#allocation2 + $0x30] sm:$0xff]  ;;  %v463_v12 = vld [vmem:[#allocation2 + $0x38] sm:$0xff] }
  0x20   :  { %570 = vmatpush.msrb.mxu0 %v479_v25  ;;  %590 = vmatpush.msrb.mxu1 %v511_v26  ;;  %v494_v9 = vld [vmem:[#allocation2 + $0x130] sm:$0xff]  ;;  %v495_v13 = vld [vmem:[#allocation2 + $0x138] sm:$0xff]  ;;  %v460_v15 = vld [vmem:[#allocation2 + $0x20] sm:$0xff] }
  0x21   :  { %534 = vmatpush.msra.mxu2 %v470_v45  ;;  %554 = vmatpush.msra.mxu3 %v502_v46  ;;  %v492_v16 = vld [vmem:[#allocation2 + $0x120] sm:$0xff]  ;;  %v461_v20 = vld [vmem:[#allocation2 + $0x28] sm:$0xff]  ;;  %v458_v26 = vld [vmem:[#allocation2 + $0x10] sm:$0xff] }
  0x22   :  { %571 = vmatpush.msrb.mxu0 %v477_v29  ;;  %591 = vmatpush.msrb.mxu1 %v509_v30  ;;  %v493_v21 = vld [vmem:[#allocation2 + $0x128] sm:$0xff]  ;;  %v490_v27 = vld [vmem:[#allocation2 + $0x110] sm:$0xff]  ;;  %v459_v33 = vld [vmem:[#allocation2 + $0x18] sm:$0xff] }
  0x23   :  { %535 = vmatpush.msra.mxu2 %v468_v52  ;;  %555 = vmatpush.msra.mxu3 %v500_v53  ;;  %v491_v34 = vld [vmem:[#allocation2 + $0x118] sm:$0xff]  ;;  %v456_v39 = vld [vmem:[#allocation2] sm:$0xff] }
  0x24   :  { %572 = vmatpush.msrb.mxu0 %v475_v37  ;;  %592 = vmatpush.msrb.mxu1 %v507_v38  ;;  %v488_v40 = vld [vmem:[#allocation2 + $0x100] sm:$0xff] }
  0x25   :  { %536 = vmatpush.msra.mxu2 %v466_v58  ;;  %556 = vmatpush.msra.mxu3 %v498_v59  ;;  %v2047_v58 = vmov 2131351028  }
  0x26   :  { %573 = vmatpush.msrb.mxu0 %v473_v43  ;;  %593 = vmatpush.msrb.mxu1 %v505_v44 }
  0x27   :  { %537 = vmatpush.msra.mxu2 %v464_v1  ;;  %557 = vmatpush.msra.mxu3 %v496_v2 }
  0x28   :  { %574 = vmatpush.msrb.mxu0 %v471_v50  ;;  %594 = vmatpush.msrb.mxu1 %v503_v51  ;;  %v2046_v50 = vmov 2475754826  }
  0x29   :  { %538 = vmatpush.msra.mxu2 %v462_v8  ;;  %558 = vmatpush.msra.mxu3 %v494_v9 }
  0x2a   :  { %575 = vmatpush.msrb.mxu0 %v469_v56  ;;  %595 = vmatpush.msrb.mxu1 %v501_v57 }
  0x2b   :  { %539 = vmatpush.msra.mxu2 %v460_v15  ;;  %559 = vmatpush.msra.mxu3 %v492_v16 }
  0x2c   :  { %576 = vmatpush.msrb.mxu0 %v467_v63  ;;  %596 = vmatpush.msrb.mxu1 %v499_v0 }
  0x2d   :  { %540 = vmatpush.msra.mxu2 %v458_v26  ;;  %560 = vmatpush.msra.mxu3 %v490_v27 }
  0x2e   :  { %577 = vmatpush.msrb.mxu0 %v465_v4  ;;  %597 = vmatpush.msrb.mxu1 %v497_v5 }
  0x2f   :  { %541 = vmatpush.msra.mxu2 %v456_v39  ;;  %561 = vmatpush.msra.mxu3 %v488_v40 }
  0x30   :  { %578 = vmatpush.msrb.mxu0 %v463_v12  ;;  %598 = vmatpush.msrb.mxu1 %v495_v13 }
  0x32   :  { %579 = vmatpush.msrb.mxu0 %v461_v20  ;;  %599 = vmatpush.msrb.mxu1 %v493_v21 }
  0x34   :  { %580 = vmatpush.msrb.mxu0 %v459_v33  ;;  %600 = vmatpush.msrb.mxu1 %v491_v34 }
  0x94   :  { %v123_v31 = vpop.f32.mrf.mxu0  ;;  %v143_v32 = vpop.f32.mrf.mxu1 }
  0x95   :  { %v2127_v35 = vadd.f32 %v123_v31, %v89_v23  ;;  %v2129_v36 = vadd.f32 %v143_v32, %v90_v24  ;;  %v2044_v31 = vmov 1326507024  }
  0x97   :  { %v149_v41 = vand.u32 2139095040, %v2127_v35  ;;  %v304_v42 = vand.u32 2139095040, %v2129_v36  ;;  %v146_v47 = vand.u32 2147483647, %v2127_v35  ;;  %v301_v17 = vand.u32 2147483647, %v2129_v36 }
  0x99   :  { %v150_v48 = vshrl.u32 %v149_v41, 23  ;;  %v305_v49 = vshrl.u32 %v304_v42, 23  ;;  %v153_v60 = vand.u32 8388607, %v146_v47  ;;  %v2045_v41 = vmov 683565275  }
  0x9a   :  { %v2169_v44 = vand.u32 8388607, %v301_v17 }
  0x9b   :  { %v1924_v54 = vadd.s32 4294967169, %v150_v48  ;;  %v1927_v55 = vadd.s32 4294967169, %v305_v49  ;;  %v154_v3 = vor.u32 8388608, %v153_v60  ;;  %v457_v48 = vld [vmem:[#allocation2 + $0x8] sm:$0xff] }
  0x9c   :  { %v489_v49 = vld [vmem:[#allocation2 + $0x108] sm:$0xff]  ;;  %581 = vmatpush.msrb.mxu0 %v457_v48  ;;  %v309_v27 = vor.u32 8388608, %v2169_v44 }
  0x9d   :  { %v156_v61 = vadd.s32 1, %v1924_v54  ;;  %v311_v62 = vadd.s32 1, %v1927_v55  ;;  %v2140_v14 = vshll.u32 %v154_v3, 8  ;;  %601 = vmatpush.msrb.mxu1 %v489_v49 }
  0x9f   :  { %vm157_vm2 = vcmp.gt.s32.totalorder %v156_v61, 0  ;;  %vm312_vm3 = vcmp.gt.s32.totalorder %v311_v62, 0  ;;  %v2158_v37 = vand.u32 65535, %v2140_v14  ;;  %v2165_v43 = vshrl.u32 %v2140_v14, 16 }
  0xa0   :  { %v158_v6 = vsel %vm157_vm2, %v156_v61, 0  ;;  %v313_v7 = vsel %vm312_vm3, %v311_v62, 0 }
  0xa1   :  { %v2136_v10 = vand.u32 31, %v158_v6  ;;  %v2138_v11 = vand.u32 31, %v313_v7  ;;  %v2143_v18 = vshrl.u32 %v158_v6, 5  ;;  %v2148_v24 = vshrl.u32 %v313_v7, 5 }
  0xa3   :  { %v161_v19 = vsub.s32 32, %v2136_v10  ;;  %v172_v23 = vshll.u32 %v2042_v22, %v2136_v10  ;;  %v2151_v25 = vsub.s32 32, %v2138_v11  ;;  %v175_v30 = vshll.u32 %v2043_v28, %v2136_v10 }
  0xa4   :  { %v327_v38 = vshll.u32 %v2042_v22, %v2138_v11  ;;  %v163_v42 = vshll.u32 %v2045_v41, %v2136_v10  ;;  %vm181_vm4 = vcmp.lt.s32.totalorder %v2143_v18, 4  ;;  %v330_v53 = vshll.u32 %v2043_v28, %v2138_v11 }
  0xa5   :  { %v173_v29 = vshrl.u32 %v2043_v28, %v161_v19  ;;  %v176_v32 = vshrl.u32 %v2044_v31, %v161_v19  ;;  %v164_v51 = vshrl.u32 %v2046_v50, %v161_v19  ;;  %v328_v52 = vshrl.u32 %v2043_v28, %v2151_v25 }
  0xa6   :  { %v331_v54 = vshrl.u32 %v2044_v31, %v2151_v25  ;;  %vm336_vm5 = vcmp.lt.s32.totalorder %v2148_v24, 4  ;;  %v166_v57 = vshll.u32 %v2046_v50, %v2136_v10  ;;  %v167_v59 = vshrl.u32 %v2047_v58, %v161_v19 }
  0xa7   :  { %v174_v45 = vor.u32 %v173_v29, %v172_v23  ;;  %v177_v46 = vor.u32 %v176_v32, %v175_v30  ;;  %v165_v56 = vor.u32 %v164_v51, %v163_v42  ;;  %v162_v60 = vshrl.u32 %v2045_v41, %v161_v19 }
  0xa8   :  { %v169_v61 = vshll.u32 %v2047_v58, %v2136_v10  ;;  %v170_v62 = vshrl.u32 %v2042_v22, %v161_v19  ;;  %vm178_vm6 = vcmp.lt.s32.totalorder %v2143_v18, 1  ;;  %v168_v0 = vor.u32 %v167_v59, %v166_v57 }
  0xa9   :  { %v191_v55 = vsel %vm181_vm4, %v177_v46, 1326507024  ;;  %v187_v63 = vsel %vm181_vm4, %v174_v45, 920167782  ;;  %vm179_vm7 = vcmp.lt.s32.totalorder %v2143_v18, 2  ;;  %vm180_vm8 = vcmp.lt.s32.totalorder %v2143_v18, 3 }
  0xaa   :  { %v2194_v1 = vor.u32 %v328_v52, %v327_v38  ;;  %v332_v2 = vor.u32 %v331_v54, %v330_v53  ;;  %v171_v3 = vor.u32 %v170_v62, %v169_v61  ;;  %v192_v4 = vsel %vm180_vm8, %v174_v45, %v191_v55 }
  0xab   :  { %v186_v5 = vsel %vm178_vm6, %v165_v56, %v168_v0  ;;  %v318_v6 = vshll.u32 %v2045_v41, %v2138_v11  ;;  %v319_v7 = vshrl.u32 %v2046_v50, %v2151_v25  ;;  %v321_v8 = vshll.u32 %v2046_v50, %v2138_v11 }
  0xac   :  { %v188_v9 = vsel %vm180_vm8, %v171_v3, %v187_v63  ;;  %v190_v10 = vsel %vm178_vm6, %v168_v0, %v171_v3  ;;  %v322_v12 = vshrl.u32 %v2047_v58, %v2151_v25  ;;  %v324_v13 = vshll.u32 %v2047_v58, %v2138_v11 }
  0xad   :  { %v183_v15 = vsel %vm181_vm4, %v171_v3, 2102212464  ;;  %v189_v16 = vsel %vm179_vm7, %v186_v5, %v188_v9  ;;  %v193_v19 = vsel %vm179_vm7, %v190_v10, %v192_v4  ;;  %v325_v20 = vshrl.u32 %v2042_v22, %v2151_v25 }
  0xae   :  { %v197_v21 = vand.u32 65535, %v193_v19  ;;  %v198_v23 = vshrl.u32 %v193_v19, 16  ;;  %v219_v26 = vand.u32 65535, %v189_v16  ;;  %v342_v11 = vsel %vm336_vm5, %v2194_v1, 920167782 }
  0xaf   :  { %v346_v29 = vsel %vm336_vm5, %v332_v2, 1326507024  ;;  %v182_v30 = vsel %vm178_vm6, %v162_v60, %v165_v56  ;;  %v220_v32 = vshrl.u32 %v189_v16, 16  ;;  %v184_v33 = vsel %vm180_vm8, %v168_v0, %v183_v15 }
  0xb0   :  { %v200_v34 = vmul.u32 %v198_v23, %v2158_v37  ;;  %v201_v38 = vmul.u32 %v197_v21, %v2165_v43  ;;  %v2234_v39 = vor.u32 %v319_v7, %v318_v6  ;;  %v223_v42 = vmul.u32 %v219_v26, %v2165_v43 }
  0xb1   :  { %v222_v40 = vmul.u32 %v220_v32, %v2158_v37  ;;  %v2238_v44 = vor.u32 %v322_v12, %v321_v8  ;;  %v2240_v45 = vor.u32 %v325_v20, %v324_v13  ;;  %v199_v46 = vmul.u32 %v197_v21, %v2158_v37 }
  0xb2   :  { %v202_v48 = vmul.u32 %v198_v23, %v2165_v43  ;;  %v203_v49 = vshll.u32 %v200_v34, 16  ;;  %vm333_vm9 = vcmp.lt.s32.totalorder %v2148_v24, 1  ;;  %v204_v51 = vshrl.u32 %v200_v34, 16 }
  0xb3   :  { %v221_v52 = vmul.u32 %v219_v26, %v2158_v37  ;;  %v224_v53 = vmul.u32 %v220_v32, %v2165_v43  ;;  %v225_v54 = vshll.u32 %v222_v40, 16  ;;  %v205_v55 = vshll.u32 %v201_v38, 16 }
  0xb4   :  { %v206_v56 = vshrl.u32 %v201_v38, 16  ;;  %vm207_vm10 = vc.u32 %v199_v46, %v203_v49  ;;  %v209_v57 = vadd.s32 %v203_v49, %v199_v46  ;;  %v2048_v59 = vmov 0  }
  0xb5   :  { %v208_v60 = vsel %vm207_vm10, 1, %v2048_v59  ;;  %v227_v61 = vshll.u32 %v223_v42, 16  ;;  %vm229_vm11 = vc.u32 %v221_v52, %v225_v54  ;;  %v231_v62 = vadd.s32 %v225_v54, %v221_v52 }
  0xb6   :  { %v210_v63 = vadd.s32 %v208_v60, %v202_v48  ;;  %vm211_vm12 = vc.u32 %v209_v57, %v205_v55  ;;  %v226_v0 = vshrl.u32 %v222_v40, 16  ;;  %v230_v2 = vsel %vm229_vm11, 1, %v2048_v59 }
  0xb7   :  { %v212_v37 = vsel %vm211_vm12, 1, %v2048_v59  ;;  %v228_v3 = vshrl.u32 %v223_v42, 16  ;;  %v232_v43 = vadd.s32 %v230_v2, %v224_v53  ;;  %vm233_vm13 = vc.u32 %v231_v62, %v227_v61 }
  0xb8   :  { %v214_v4 = vadd.s32 %v212_v37, %v210_v63  ;;  %v234_v5 = vsel %vm233_vm13, 1, %v2048_v59  ;;  %vm335_vm14 = vcmp.lt.s32.totalorder %v2148_v24, 3  ;;  %v341_v6 = vsel %vm333_vm9, %v2234_v39, %v2238_v44 }
  0xb9   :  { %v236_v7 = vadd.s32 %v234_v5, %v232_v43  ;;  %vm334_vm15 = vcmp.lt.s32.totalorder %v2148_v24, 2  ;;  %v343_v8 = vsel %vm335_vm14, %v2240_v45, %v342_v11  ;;  %v345_v9 = vsel %vm333_vm9, %v2238_v44, %v2240_v45 }
  0xba   :  { %v215_v10 = vadd.s32 %v214_v4, %v204_v51  ;;  %v344_v12 = vsel %vm334_vm15, %v341_v6, %v343_v8  ;;  %v347_v13 = vsel %vm335_vm14, %v2194_v1, %v346_v29  ;;  %v2269_v15 = vshll.u32 %v309_v27, 8 }
  0xbb   :  { %v2271_v16 = vadd.s32 %v231_v62, %v227_v61  ;;  %v237_v19 = vadd.s32 %v236_v7, %v226_v0  ;;  %v348_v20 = vsel %vm334_vm15, %v345_v9, %v347_v13  ;;  %v374_v21 = vand.u32 65535, %v344_v12 }
  0xbc   :  { %v2275_v23 = vadd.s32 %v215_v10, %v206_v56  ;;  %v351_v26 = vshrl.u32 %v2269_v15, 16  ;;  %v352_v11 = vand.u32 65535, %v348_v20  ;;  %v375_v32 = vshrl.u32 %v344_v12, 16 }
  0xbd   :  { %v185_v34 = vsel %vm179_vm7, %v182_v30, %v184_v33  ;;  %v238_v38 = vadd.s32 %v237_v19, %v228_v3  ;;  %v350_v1 = vand.u32 65535, %v2269_v15  ;;  %v353_v27 = vshrl.u32 %v348_v20, 16 }
  0xbe   :  { %vm241_vm0 = vc.u32 %v2275_v23, %v2271_v16  ;;  %v356_v29 = vmul.u32 %v352_v11, %v351_v26  ;;  %v239_v46 = vmul.u32 %v2140_v14, %v185_v34  ;;  %v317_v48 = vshrl.u32 %v2045_v41, %v2151_v25 }
  0xbf   :  { %v242_v40 = vadd.s32 1, %v238_v38  ;;  %v355_v42 = vmul.u32 %v353_v27, %v350_v1  ;;  %v377_v49 = vmul.u32 %v375_v32, %v350_v1  ;;  %v378_v51 = vmul.u32 %v374_v21, %v351_v26 }
  0xc0   :  { %v354_v18 = vmul.u32 %v352_v11, %v350_v1  ;;  %v357_v30 = vmul.u32 %v353_v27, %v351_v26  ;;  %v360_v54 = vshll.u32 %v356_v29, 16  ;;  %v376_v55 = vmul.u32 %v374_v21, %v350_v1 }
  0xc1   :  { %v243_v52 = vsel %vm241_vm0, %v242_v40, %v238_v38  ;;  %v358_v33 = vshll.u32 %v355_v42, 16  ;;  %v380_v56 = vshll.u32 %v377_v49, 16  ;;  %v379_v60 = vmul.u32 %v375_v32, %v351_v26 }
  0xc2   :  { %v244_v53 = vadd.s32 %v243_v52, %v239_v46  ;;  %v382_v61 = vshll.u32 %v378_v51, 16  ;;  %v338_v25 = vsel %vm336_vm5, %v2240_v45, 2102212464  ;;  %v359_v4 = vshrl.u32 %v355_v42, 16 }
  0xc3   :  { %vm362_vm1 = vc.u32 %v354_v18, %v358_v33  ;;  %v364_v57 = vadd.s32 %v358_v33, %v354_v18  ;;  %vm384_vm2 = vc.u32 %v376_v55, %v380_v56  ;;  %v386_v63 = vadd.s32 %v380_v56, %v376_v55 }
  0xc4   :  { %v245_v62 = vadd.s32 536870912, %v244_v53  ;;  %v363_v14 = vsel %vm362_vm1, 1, %v2048_v59  ;;  %v385_v2 = vsel %vm384_vm2, 1, %v2048_v59  ;;  %v381_v8 = vshrl.u32 %v377_v49, 16 }
  0xc5   :  { %v365_v0 = vadd.s32 %v363_v14, %v357_v30  ;;  %vm366_vm3 = vc.u32 %v364_v57, %v360_v54  ;;  %v387_v43 = vadd.s32 %v385_v2, %v379_v60  ;;  %vm388_vm4 = vc.u32 %v386_v63, %v382_v61 }
  0xc6   :  { %v2291_v37 = vshrl.u32 %v245_v62, 30  ;;  %v367_v3 = vsel %vm366_vm3, 1, %v2048_v59  ;;  %v389_v6 = vsel %vm388_vm4, 1, %v2048_v59  ;;  %v337_v45 = vsel %vm333_vm9, %v317_v48, %v2234_v39 }
  0xc7   :  { %v369_v5 = vadd.s32 %v367_v3, %v365_v0  ;;  %v391_v9 = vadd.s32 %v389_v6, %v387_v43  ;;  %v339_v10 = vsel %vm335_vm14, %v2238_v44, %v338_v25  ;;  %v361_v12 = vshrl.u32 %v356_v29, 16 }
  0xc8   :  { %v247_v7 = vshll.u32 %v2291_v37, 30  ;;  %v383_v20 = vshrl.u32 %v378_v51, 16  ;;  %v390_v11 = vadd.s32 %v386_v63, %v382_v61  ;;  %v340_v34 = vsel %vm334_vm15, %v337_v45, %v339_v10 }
  0xc9   :  { %v370_v13 = vadd.s32 %v369_v5, %v359_v4  ;;  %v392_v21 = vadd.s32 %v391_v9, %v381_v8  ;;  %v394_v40 = vmul.u32 %v2269_v15, %v340_v34  ;;  %v240_v49 = vadd.s32 %v2271_v16, %v2275_v23 }
  0xca   :  { %v248_v19 = vsub.s32 %v244_v53, %v247_v7  ;;  %vm148_vm9 = vcmp.lt.s32.totalorder %v2127_v35, 0  ;;  %vm2313_vm11 = vcmp.le.f32.partialorder %v146_v47, 0.7853982  ;;  %v270_v2 = vsub.s32 4, %v2291_v37 }
  0xcb   :  { %v371_v26 = vadd.s32 %v370_v13, %v361_v12  ;;  %v393_v38 = vadd.s32 %v392_v21, %v383_v20  ;;  %vm303_vm12 = vcmp.lt.s32.totalorder %v2129_v36, 0  ;;  %vm2331_vm13 = vcmp.le.f32.partialorder %v301_v17, 0.7853982 }
  0xcc   :  { %vm249_vm5 = vcmp.lt.s32.totalorder %v248_v19, 0  ;;  %v250_v32 = vsub.s32 0, %v248_v19  ;;  %v271_v12 = vsel %vm148_vm9, %v270_v2, %v2291_v37  ;;  %vm289_vm1 = vweird.f32 %v2127_v35 }
  0xcd   :  { %vm396_vm6 = vc.u32 %v371_v26, %v390_v11  ;;  %v397_v39 = vadd.s32 1, %v393_v38  ;;  %v395_v4 = vadd.s32 %v390_v11, %v371_v26  ;;  %v273_v26 = vsel %vm2313_vm11, 0, %v271_v12  ;;  %v520_v12 = vld [vmem:[%s3069_s4] sm:$0x3] }
  0xce   :  { %v251_v1 = vsel %vm249_vm5, %v250_v32, %v248_v19  ;;  %vm444_vm5 = vweird.f32 %v2129_v36 }
  0xcf   :  { %v252_v27 = vclz %v251_v1  ;;  %v398_v44 = vsel %vm396_vm6, %v397_v39, %v393_v38 }
  0xd0   :  { %v399_v42 = vadd.s32 %v398_v44, %v394_v40  ;;  %v290_v40 = vadd.s32 3, %v273_v26 }
  0xd1   :  { %v1925_v29 = vadd.s32 4294967294, %v252_v27 }
  0xd2   :  { %v400_v46 = vadd.s32 536870912, %v399_v42 }
  0xd3   :  { %vm1926_vm7 = vcmp.lt.s32.totalorder %v1925_v29, 0 }
  0xd4   :  { %v255_v48 = vsel %vm1926_vm7, 0, %v1925_v29  ;;  %v2307_v24 = vshrl.u32 %v400_v46, 30 }
  0xd5   :  { %v256_v51 = vsub.s32 32, %v255_v48  ;;  %v260_v52 = vsub.s32 4294967266, %v255_v48  ;;  %v257_v18 = vshll.u32 %v248_v19, %v255_v48 }
  0xd6   :  { %v402_v53 = vshll.u32 %v2307_v24, 30 }
  0xd7   :  { %v258_v30 = vshrl.u32 %v240_v49, %v256_v51  ;;  %v261_v33 = vadd.s32 127, %v260_v52  ;;  %v291_v49 = vand.u32 3, %v290_v40  ;;  %v946_v40 = vld [vmem:[#allocation4 + $0xf0] sm:$0xff]  ;;  %v945_v51 = vld [vmem:[#allocation4 + $0xe8] sm:$0xff] }
  0xd8   :  { %v403_v55 = vsub.s32 %v399_v42, %v402_v53  ;;  %986 = vmatpush.msrb.mxu2 %v946_v40  ;;  %v961_v40 = vld [vmem:[#allocation4 + $0x168] sm:$0xff] }
  0xd9   :  { %v259_v54 = vor.u32 %v258_v30, %v257_v18  ;;  %v262_v15 = vshll.u32 %v261_v33, 23  ;;  %v425_v33 = vsub.s32 4, %v2307_v24  ;;  %vm293_vm14 = vcmp.eq.s32.totalorder %v291_v49, 0 }
  0xda   :  { %vm404_vm8 = vcmp.lt.s32.totalorder %v403_v55, 0  ;;  %v405_v57 = vsub.s32 0, %v403_v55  ;;  %vm296_vm15 = vcmp.eq.s32.totalorder %v291_v49, 2  ;;  %vm292_vm0 = vcmp.lt.s32.totalorder %v291_v49, 2  ;;  %v973_v49 = vld [vmem:[#allocation4 + $0x1c8] sm:$0xff] }
  0xdb   :  { %v263_v56 = vor.u32 4788187, %v262_v15  ;;  %v266_v61 = vcvt.s32.f32 %v259_v54 }
  0xdc   :  { %v406_v62 = vsel %vm404_vm8, %v405_v57, %v403_v55 }
  0xdd   :  { %v264_v60 = vand.u32 2147483647, %v263_v56  ;;  %v407_v14 = vclz %v406_v62 }
  0xdf   :  { %v267_v16 = vmul.f32 %v266_v61, %v264_v60  ;;  %v1928_v23 = vadd.s32 4294967294, %v407_v14  ;;  %v426_v60 = vsel %vm303_vm12, %v425_v33, %v2307_v24 }
  0xe1   :  { %v268_v63 = vxor.u32 2147483648, %v267_v16  ;;  %vm1929_vm10 = vcmp.lt.s32.totalorder %v1928_v23, 0 }
  0xe2   :  { %v410_v3 = vsel %vm1929_vm10, 0, %v1928_v23  ;;  %v428_v23 = vsel %vm2331_vm13, 0, %v426_v60  ;;  %v968_v60 = vld [vmem:[#allocation4 + $0x1a0] sm:$0xff] }
  0xe3   :  { %v269_v0 = vsel %vm148_vm9, %v268_v63, %v267_v16  ;;  %v411_v5 = vsub.s32 32, %v410_v3  ;;  %v415_v6 = vsub.s32 4294967266, %v410_v3  ;;  %v412_v8 = vshll.u32 %v403_v55, %v410_v3 }
  0xe4   :  { %v272_v43 = vsel %vm2313_vm11, %v2127_v35, %v269_v0  ;;  %v445_v3 = vadd.s32 3, %v428_v23  ;;  %v939_v23 = vld [vmem:[#allocation4 + $0xb8] sm:$0xff] }
  0xe5   :  { %v274_v7 = vmul.f32 %v272_v43, %v272_v43  ;;  %v413_v9 = vshrl.u32 %v395_v4, %v411_v5  ;;  %v416_v47 = vadd.s32 127, %v415_v6 }
  0xe6   :  { %v446_v6 = vand.u32 3, %v445_v3  ;;  %v936_v3 = vld [vmem:[#allocation4 + $0xa0] sm:$0xff] }
  0xe7   :  { %v275_v45 = vmul.f32 -0.001358992, %v274_v7  ;;  %v282_v10 = vmul.f32 -0.00019511016, %v274_v7  ;;  %v414_v13 = vor.u32 %v413_v9, %v412_v8  ;;  %v417_v19 = vshll.u32 %v416_v47, 23 }
  0xe8   :  { %vm448_vm2 = vcmp.eq.s32.totalorder %v446_v6, 0  ;;  %vm451_vm3 = vcmp.eq.s32.totalorder %v446_v6, 2  ;;  %vm447_vm4 = vcmp.lt.s32.totalorder %v446_v6, 2  ;;  %v964_v6 = vld [vmem:[#allocation4 + $0x180] sm:$0xff] }
  0xe9   :  { %v276_v20 = vadd.f32 0.041655596, %v275_v45  ;;  %v283_v21 = vadd.f32 0.008332121, %v282_v10  ;;  %v418_v32 = vor.u32 4788187, %v417_v19  ;;  %v421_v1 = vcvt.s32.f32 %v414_v13 }
  0xea   :  { %v523_v13 = vperm.slane %v520_v12, 1 }
  0xeb   :  { %v277_v11 = vmul.f32 %v276_v20, %v274_v7  ;;  %v284_v34 = vmul.f32 %v283_v21, %v274_v7  ;;  %v419_v38 = vand.u32 2147483647, %v418_v32  ;;  %v522_v21 = vperm.slane %v520_v12, 0 }
  0xed   :  { %v278_v39 = vadd.f32 -0.4999988, %v277_v11  ;;  %v285_v27 = vadd.f32 -0.16666654, %v284_v34  ;;  %v422_v44 = vmul.f32 %v421_v1, %v419_v38  ;;  %v978_v11 = vld [vmem:[#allocation4 + $0x1f0] sm:$0xff]  ;;  %v979_v34 = vld [vmem:[#allocation4 + $0x1f8] sm:$0xff] }
  0xee   :  { %v976_v38 = vld [vmem:[#allocation4 + $0x1e0] sm:$0xff]  ;;  %1006 = vmatpush.msrb.mxu3 %v978_v11  ;;  %1046 = vmatpush.msra.mxu1 %v979_v34 }
  0xef   :  { %v279_v29 = vmul.f32 %v278_v39, %v274_v7  ;;  %v286_v42 = vmul.f32 %v285_v27, %v274_v7  ;;  %v423_v46 = vxor.u32 2147483648, %v422_v44  ;;  %v974_v39 = vld [vmem:[#allocation4 + $0x1d0] sm:$0xff]  ;;  %v975_v27 = vld [vmem:[#allocation4 + $0x1d8] sm:$0xff]  ;;  %v960_v34 = vld [vmem:[#allocation4 + $0x160] sm:$0xff] }
  0xf0   :  { %1007 = vmatpush.msrb.mxu3 %v976_v38 }
  0xf1   :  { %v280_v37 = vadd.f32 1.0, %v279_v29  ;;  %v287_v48 = vadd.f32 1.0, %v286_v42  ;;  %v424_v52 = vsel %vm303_vm12, %v423_v46, %v422_v44  ;;  %v947_v44 = vld [vmem:[#allocation4 + $0xf8] sm:$0xff]  ;;  %v944_v46 = vld [vmem:[#allocation4 + $0xe0] sm:$0xff] }
  0xf2   :  { %v427_v53 = vsel %vm2331_vm13, %v2129_v36, %v424_v52  ;;  %v977_v36 = vld [vmem:[#allocation4 + $0x1e8] sm:$0xff]  ;;  %1026 = vmatpush.msra.mxu0 %v947_v44  ;;  %1008 = vmatpush.msrb.mxu3 %v974_v39 }
  0xf3   :  { %v288_v18 = vmul.f32 %v287_v48, %v272_v43  ;;  %v297_v30 = vxor.u32 2147483648, %v280_v37  ;;  %v429_v54 = vmul.f32 %v427_v53, %v427_v53  ;;  %1047 = vmatpush.msra.mxu1 %v977_v36  ;;  %v972_v48 = vld [vmem:[#allocation4 + $0x1c0] sm:$0xff]  ;;  %987 = vmatpush.msrb.mxu2 %v944_v46  ;;  %v933_v44 = vld [vmem:[#allocation4 + $0x88] sm:$0xff] }
  0xf4   :  { %1027 = vmatpush.msra.mxu0 %v945_v51  ;;  %1009 = vmatpush.msrb.mxu3 %v972_v48  ;;  %v930_v51 = vld [vmem:[#allocation4 + $0x70] sm:$0xff] }
  0xf5   :  { %v294_v15 = vxor.u32 2147483648, %v288_v18  ;;  %v430_v55 = vmul.f32 -0.001358992, %v429_v54  ;;  %v437_v17 = vmul.f32 -0.00019511016, %v429_v54  ;;  %v298_v57 = vsel %vm296_vm15, %v297_v30, %v288_v18  ;;  %1048 = vmatpush.msra.mxu1 %v975_v27  ;;  %v942_v18 = vld [vmem:[#allocation4 + $0xd0] sm:$0xff] }
  0xf6   :  { %v943_v30 = vld [vmem:[#allocation4 + $0xd8] sm:$0xff]  ;;  %988 = vmatpush.msrb.mxu2 %v942_v18 }
  0xf7   :  { %v295_v56 = vsel %vm293_vm14, %v280_v37, %v294_v15  ;;  %v431_v62 = vadd.f32 0.041655596, %v430_v55  ;;  %v438_v14 = vadd.f32 0.008332121, %v437_v17  ;;  %1049 = vmatpush.msra.mxu1 %v973_v49  ;;  %v940_v17 = vld [vmem:[#allocation4 + $0xc0] sm:$0xff]  ;;  %1028 = vmatpush.msra.mxu0 %v943_v30  ;;  %v958_v49 = vld [vmem:[#allocation4 + $0x150] sm:$0xff] }
  0xf8   :  { %v299_v61 = vsel %vm292_vm0, %v295_v56, %v298_v57  ;;  %v941_v56 = vld [vmem:[#allocation4 + $0xc8] sm:$0xff]  ;;  %989 = vmatpush.msrb.mxu2 %v940_v17 }
  0xf9   :  { %v300_v16 = vsel %vm289_vm1, nan, %v299_v61  ;;  %v432_v63 = vmul.f32 %v431_v62, %v429_v54  ;;  %v439_v25 = vmul.f32 %v438_v14, %v429_v54  ;;  %v969_v61 = vld [vmem:[#allocation4 + $0x1a8] sm:$0xff]  ;;  %1029 = vmatpush.msra.mxu0 %v941_v56  ;;  %v956_v56 = vld [vmem:[#allocation4 + $0x140] sm:$0xff] }
  0xfa   :  { %542 = vmatmul.f32.vlgmr.msra.gmra.mxu2 %v300_v16  ;;  %582 = vmatmul.f32.vlgmr.msrb.gmra.mxu0 %v300_v16  ;;  %v938_v16 = vld [vmem:[#allocation4 + $0xb0] sm:$0xff] }
  0xfb   :  { %v433_v0 = vadd.f32 -0.4999988, %v432_v63  ;;  %v440_v2 = vadd.f32 -0.16666654, %v439_v25  ;;  %v966_v25 = vld [vmem:[#allocation4 + $0x190] sm:$0xff]  ;;  %990 = vmatpush.msrb.mxu2 %v938_v16  ;;  %1030 = vmatpush.msra.mxu0 %v939_v23  ;;  %v929_v16 = vld [vmem:[#allocation4 + $0x68] sm:$0xff] }
  0xfd   :  { %v434_v43 = vmul.f32 %v433_v0, %v429_v54  ;;  %v441_v4 = vmul.f32 %v440_v2, %v429_v54  ;;  %v971_v54 = vld [vmem:[#allocation4 + $0x1b8] sm:$0xff]  ;;  %991 = vmatpush.msrb.mxu2 %v936_v3 }
  0xfe   :  { %1050 = vmatpush.msra.mxu1 %v971_v54  ;;  %v967_v0 = vld [vmem:[#allocation4 + $0x198] sm:$0xff] }
  0xff   :  { %v435_v5 = vadd.f32 1.0, %v434_v43  ;;  %v442_v24 = vadd.f32 1.0, %v441_v4  ;;  %v937_v43 = vld [vmem:[#allocation4 + $0xa8] sm:$0xff] }
 0x100   :  { %1051 = vmatpush.msra.mxu1 %v969_v61  ;;  %1031 = vmatpush.msra.mxu0 %v937_v43 }
 0x101   :  { %v443_v35 = vmul.f32 %v442_v24, %v427_v53  ;;  %v452_v7 = vxor.u32 2147483648, %v435_v5  ;;  %v970_v53 = vld [vmem:[#allocation4 + $0x1b0] sm:$0xff] }
 0x102   :  { %1010 = vmatpush.msrb.mxu3 %v970_v53  ;;  %1052 = vmatpush.msra.mxu1 %v967_v0  ;;  %v931_v53 = vld [vmem:[#allocation4 + $0x78] sm:$0xff]  ;;  %v954_v0 = vld [vmem:[#allocation4 + $0x130] sm:$0xff] }
 0x103   :  { %v449_v8 = vxor.u32 2147483648, %v443_v35  ;;  %v453_v47 = vsel %vm451_vm3, %v452_v7, %v443_v35  ;;  %v965_v35 = vld [vmem:[#allocation4 + $0x188] sm:$0xff] }
 0x104   :  { %1011 = vmatpush.msrb.mxu3 %v968_v60  ;;  %1053 = vmatpush.msra.mxu1 %v965_v35 }
 0x105   :  { %v450_v9 = vsel %vm448_vm2, %v435_v5, %v449_v8  ;;  %v934_v8 = vld [vmem:[#allocation4 + $0x90] sm:$0xff] }
 0x106   :  { %v454_v45 = vsel %vm447_vm4, %v450_v9, %v453_v47  ;;  %1012 = vmatpush.msrb.mxu3 %v966_v25  ;;  %v935_v9 = vld [vmem:[#allocation4 + $0x98] sm:$0xff]  ;;  %992 = vmatpush.msrb.mxu2 %v934_v8 }
 0x107   :  { %v455_v10 = vsel %vm444_vm5, nan, %v454_v45  ;;  %v962_v45 = vld [vmem:[#allocation4 + $0x170] sm:$0xff]  ;;  %1032 = vmatpush.msra.mxu0 %v935_v9  ;;  %v927_v8 = vld [vmem:[#allocation4 + $0x58] sm:$0xff] }
 0x108   :  { %562 = vmatmul.f32.vlgmr.msra.gmra.mxu3 %v455_v10  ;;  %602 = vmatmul.f32.vlgmr.msrb.gmra.mxu1 %v455_v10 }
 0x109   :  { %1013 = vmatpush.msrb.mxu3 %v964_v6  ;;  %1033 = vmatpush.msra.mxu0 %v933_v44 }
 0x10b   :  { %1014 = vmatpush.msrb.mxu3 %v962_v45  ;;  %1034 = vmatpush.msra.mxu0 %v931_v53  ;;  %v953_v45 = vld [vmem:[#allocation4 + $0x128] sm:$0xff] }
 0x10d   :  { %1015 = vmatpush.msrb.mxu3 %v960_v34  ;;  %1035 = vmatpush.msra.mxu0 %v929_v16  ;;  %v924_v34 = vld [vmem:[#allocation4 + $0x40] sm:$0xff] }
 0x10f   :  { %1016 = vmatpush.msrb.mxu3 %v958_v49  ;;  %1036 = vmatpush.msra.mxu0 %v927_v8  ;;  %v948_v49 = vld [vmem:[#allocation4 + $0x100] sm:$0xff] }
 0x111   :  { %1017 = vmatpush.msrb.mxu3 %v956_v56 }
 0x113   :  { %1018 = vmatpush.msrb.mxu3 %v954_v0 }
 0x177   :  { %v583_v19 = vpop.f32.mrf.mxu0 }
 0x178   :  { %v584_v20 = vadd.f32 %v583_v19, %v523_v13  ;;  %v963_v19 = vld [vmem:[#allocation4 + $0x178] sm:$0xff] }
 0x179   :  { %1054 = vmatpush.msra.mxu1 %v963_v19 }
 0x17b   :  { %1055 = vmatpush.msra.mxu1 %v961_v40  ;;  %v951_v40 = vld [vmem:[#allocation4 + $0x118] sm:$0xff] }
 0x17d   :  { %v543_v26 = vpop.f32.mrf.mxu2 }
 0x17e   :  { %v544_v42 = vadd.f32 %v543_v26, %v522_v21 }
 0x185   :  { %v603_v32 = vpop.f32.mrf.mxu1 }
 0x186   :  { %v2351_v1 = vadd.f32 %v603_v32, %v584_v20  ;;  %v932_v20 = vld [vmem:[#allocation4 + $0x80] sm:$0xff] }
 0x187   :  { %993 = vmatpush.msrb.mxu2 %v932_v20 }
 0x188   :  { %v764_v29 = vand.u32 2139095040, %v2351_v1  ;;  %v761_v37 = vand.u32 2147483647, %v2351_v1 }
 0x189   :  { %994 = vmatpush.msrb.mxu2 %v930_v51 }
 0x18a   :  { %v765_v52 = vshrl.u32 %v764_v29, 23  ;;  %v768_v57 = vand.u32 8388607, %v761_v37 }
 0x18b   :  { %v563_v33 = vpop.f32.mrf.mxu3 }
 0x18c   :  { %v1933_v15 = vadd.s32 4294967169, %v765_v52  ;;  %v2355_v55 = vadd.f32 %v563_v33, %v544_v42  ;;  %v769_v4 = vor.u32 8388608, %v768_v57  ;;  %v959_v33 = vld [vmem:[#allocation4 + $0x158] sm:$0xff]  ;;  %v928_v57 = vld [vmem:[#allocation4 + $0x60] sm:$0xff] }
 0x18d   :  { %1056 = vmatpush.msra.mxu1 %v959_v33  ;;  %995 = vmatpush.msrb.mxu2 %v928_v57  ;;  %v949_v33 = vld [vmem:[#allocation4 + $0x108] sm:$0xff] }
 0x18e   :  { %v771_v62 = vadd.s32 1, %v1933_v15  ;;  %v606_v14 = vand.u32 2147483647, %v2355_v55  ;;  %v609_v63 = vand.u32 2139095040, %v2355_v55  ;;  %v2370_v11 = vshll.u32 %v769_v4, 8  ;;  %v955_v4 = vld [vmem:[#allocation4 + $0x138] sm:$0xff] }
 0x190   :  { %vm772_vm6 = vcmp.gt.s32.totalorder %v771_v62, 0  ;;  %v613_v2 = vand.u32 8388607, %v606_v14  ;;  %v610_v24 = vshrl.u32 %v609_v63, 23  ;;  %v2396_v63 = vand.u32 65535, %v2370_v11 }
 0x191   :  { %v773_v5 = vsel %vm772_vm6, %v771_v62, 0  ;;  %v957_v62 = vld [vmem:[#allocation4 + $0x148] sm:$0xff]  ;;  %v2401_v3 = vshrl.u32 %v2370_v11, 16 }
 0x192   :  { %v775_v7 = vand.u32 31, %v773_v5  ;;  %v1930_v47 = vadd.s32 4294967169, %v610_v24  ;;  %v2363_v10 = vshrl.u32 %v773_v5, 5  ;;  %v614_v13 = vor.u32 8388608, %v613_v2  ;;  %v926_v2 = vld [vmem:[#allocation4 + $0x50] sm:$0xff]  ;;  %1057 = vmatpush.msra.mxu1 %v957_v62 }
 0x193   :  { %996 = vmatpush.msrb.mxu2 %v926_v2 }
 0x194   :  { %v2365_v12 = vsub.s32 32, %v775_v7  ;;  %v778_v21 = vshll.u32 %v2045_v41, %v775_v7  ;;  %v781_v32 = vshll.u32 %v2046_v50, %v775_v7  ;;  %v787_v26 = vshll.u32 %v2042_v22, %v775_v7  ;;  %1058 = vmatpush.msra.mxu1 %v955_v4 }
 0x195   :  { %v784_v29 = vshll.u32 %v2047_v58, %v775_v7  ;;  %v790_v42 = vshll.u32 %v2043_v28, %v775_v7  ;;  %v616_v48 = vadd.s32 1, %v1930_v47  ;;  %vm796_vm7 = vcmp.lt.s32.totalorder %v2363_v10, 4  ;;  %v952_v7 = vld [vmem:[#allocation4 + $0x120] sm:$0xff]  ;;  %997 = vmatpush.msrb.mxu2 %v924_v34 }
 0x196   :  { %v779_v38 = vshrl.u32 %v2046_v50, %v2365_v12  ;;  %v782_v36 = vshrl.u32 %v2047_v58, %v2365_v12  ;;  %v785_v39 = vshrl.u32 %v2042_v22, %v2365_v12  ;;  %v788_v27 = vshrl.u32 %v2043_v28, %v2365_v12  ;;  %1019 = vmatpush.msrb.mxu3 %v952_v7 }
 0x197   :  { %v791_v46 = vshrl.u32 %v2044_v31, %v2365_v12  ;;  %v2387_v30 = vshll.u32 %v614_v13, 8  ;;  %vm617_vm8 = vcmp.gt.s32.totalorder %v616_v48, 0  ;;  %vm793_vm9 = vcmp.lt.s32.totalorder %v2363_v10, 1  ;;  %1059 = vmatpush.msra.mxu1 %v953_v45 }
 0x198   :  { %v2384_v52 = vor.u32 %v779_v38, %v778_v21  ;;  %v789_v18 = vor.u32 %v788_v27, %v787_v26  ;;  %v2389_v54 = vor.u32 %v782_v36, %v781_v32  ;;  %v786_v15 = vor.u32 %v785_v39, %v784_v29  ;;  %v950_v38 = vld [vmem:[#allocation4 + $0x110] sm:$0xff]  ;;  %v925_v27 = vld [vmem:[#allocation4 + $0x48] sm:$0xff] }
 0x199   :  { %v792_v17 = vor.u32 %v791_v46, %v790_v42  ;;  %v618_v61 = vsel %vm617_vm8, %v616_v48, 0  ;;  %vm795_vm10 = vcmp.lt.s32.totalorder %v2363_v10, 3  ;;  %v2404_v43 = vand.u32 65535, %v2387_v30  ;;  %v922_v48 = vld [vmem:[#allocation4 + $0x30] sm:$0xff]  ;;  %1020 = vmatpush.msrb.mxu3 %v950_v38  ;;  %1037 = vmatpush.msra.mxu0 %v925_v27 }
 0x19a   :  { %v802_v60 = vsel %vm796_vm7, %v789_v18, 920167782  ;;  %v620_v25 = vand.u32 31, %v618_v61  ;;  %v801_v5 = vsel %vm793_vm9, %v2384_v52, %v2389_v54  ;;  %v805_v6 = vsel %vm793_vm9, %v2389_v54, %v786_v15  ;;  %1060 = vmatpush.msra.mxu1 %v951_v40  ;;  %998 = vmatpush.msrb.mxu2 %v922_v48 }
 0x19b   :  { %v806_v23 = vsel %vm796_vm7, %v792_v17, 1326507024  ;;  %v803_v24 = vsel %vm795_vm10, %v786_v15, %v802_v60  ;;  %v2419_v47 = vshrl.u32 %v618_v61, 5  ;;  %v777_v13 = vshrl.u32 %v2045_v41, %v2365_v12  ;;  %1021 = vmatpush.msrb.mxu3 %v948_v49 }
 0x19c   :  { %v2415_v35 = vsub.s32 32, %v620_v25  ;;  %v807_v9 = vsel %vm795_vm10, %v789_v18, %v806_v23  ;;  %v798_v19 = vsel %vm796_vm7, %v786_v15, 2102212464  ;;  %v632_v32 = vshll.u32 %v2042_v22, %v620_v25  ;;  %v923_v18 = vld [vmem:[#allocation4 + $0x38] sm:$0xff]  ;;  %1061 = vmatpush.msra.mxu1 %v949_v33 }
 0x19d   :  { %v623_v36 = vshll.u32 %v2045_v41, %v620_v25  ;;  %v626_v12 = vshll.u32 %v2046_v50, %v620_v25  ;;  %vm794_vm11 = vcmp.lt.s32.totalorder %v2363_v10, 2  ;;  %v629_v44 = vshll.u32 %v2047_v58, %v620_v25  ;;  %1038 = vmatpush.msra.mxu0 %v923_v18 }
 0x19e   :  { %v624_v20 = vshrl.u32 %v2046_v50, %v2415_v35  ;;  %v627_v21 = vshrl.u32 %v2047_v58, %v2415_v35  ;;  %v633_v26 = vshrl.u32 %v2043_v28, %v2415_v35  ;;  %v630_v39 = vshrl.u32 %v2042_v22, %v2415_v35 }
 0x19f   :  { %v635_v42 = vshll.u32 %v2043_v28, %v620_v25  ;;  %v636_v46 = vshrl.u32 %v2044_v31, %v2415_v35  ;;  %v2442_v51 = vshrl.u32 %v2387_v30, 16  ;;  %v797_v53 = vsel %vm793_vm9, %v777_v13, %v2384_v52 }
 0x1a0   :  { %v634_v29 = vor.u32 %v633_v26, %v632_v32  ;;  %v799_v15 = vsel %vm795_vm10, %v2389_v54, %v798_v19  ;;  %v804_v17 = vsel %vm794_vm11, %v801_v5, %v803_v24  ;;  %v2452_v56 = vor.u32 %v624_v20, %v623_v36 }
 0x1a1   :  { %v2454_v57 = vor.u32 %v627_v21, %v626_v12  ;;  %vm638_vm12 = vcmp.lt.s32.totalorder %v2419_v47, 1  ;;  %v808_v60 = vsel %vm794_vm11, %v805_v6, %v807_v9  ;;  %v2459_v61 = vor.u32 %v630_v39, %v629_v44 }
 0x1a2   :  { %vm641_vm13 = vcmp.lt.s32.totalorder %v2419_v47, 4  ;;  %v812_v52 = vand.u32 65535, %v808_v60  ;;  %v813_v54 = vshrl.u32 %v808_v60, 16  ;;  %v637_v62 = vor.u32 %v636_v46, %v635_v42 }
 0x1a3   :  { %v647_v16 = vsel %vm641_vm13, %v634_v29, 920167782  ;;  %v834_v23 = vand.u32 65535, %v804_v17  ;;  %v835_v25 = vshrl.u32 %v804_v17, 16  ;;  %vm640_vm14 = vcmp.lt.s32.totalorder %v2419_v47, 3 }
 0x1a4   :  { %v2467_v0 = vsel %vm794_vm11, %v797_v53, %v799_v15  ;;  %v815_v2 = vmul.u32 %v813_v54, %v2396_v63  ;;  %v816_v4 = vmul.u32 %v812_v52, %v2401_v3  ;;  %v646_v5 = vsel %vm638_vm12, %v2452_v56, %v2454_v57 }
 0x1a5   :  { %v837_v24 = vmul.u32 %v835_v25, %v2396_v63  ;;  %v838_v6 = vmul.u32 %v834_v23, %v2401_v3  ;;  %vm639_vm15 = vcmp.lt.s32.totalorder %v2419_v47, 2  ;;  %v648_v10 = vsel %vm640_vm14, %v2459_v61, %v647_v16 }
 0x1a6   :  { %v650_v7 = vsel %vm638_vm12, %v2454_v57, %v2459_v61  ;;  %v814_v8 = vmul.u32 %v812_v52, %v2396_v63  ;;  %v818_v9 = vshll.u32 %v815_v2, 16  ;;  %v651_v45 = vsel %vm641_vm13, %v637_v62, 1326507024 }
 0x1a7   :  { %v817_v13 = vmul.u32 %v813_v54, %v2401_v3  ;;  %v836_v19 = vmul.u32 %v834_v23, %v2396_v63  ;;  %v840_v20 = vshll.u32 %v837_v24, 16  ;;  %v820_v21 = vshll.u32 %v816_v4, 16 }
 0x1a8   :  { %vm822_vm0 = vc.u32 %v814_v8, %v818_v9  ;;  %v824_v32 = vadd.s32 %v818_v9, %v814_v8  ;;  %v839_v26 = vmul.u32 %v835_v25, %v2401_v3  ;;  %v842_v38 = vshll.u32 %v838_v6, 16 }
 0x1a9   :  { %v823_v34 = vsel %vm822_vm0, 1, %v2048_v59  ;;  %vm844_vm1 = vc.u32 %v836_v19, %v840_v20  ;;  %v846_v36 = vadd.s32 %v840_v20, %v836_v19  ;;  %v652_v12 = vsel %vm640_vm14, %v634_v29, %v651_v45 }
 0x1aa   :  { %v825_v39 = vadd.s32 %v823_v34, %v817_v13  ;;  %vm826_vm2 = vc.u32 %v824_v32, %v820_v21  ;;  %v845_v27 = vsel %vm844_vm1, 1, %v2048_v59  ;;  %v819_v40 = vshrl.u32 %v815_v2, 16 }
 0x1ab   :  { %v827_v63 = vsel %vm826_vm2, 1, %v2048_v59  ;;  %v847_v44 = vadd.s32 %v845_v27, %v839_v26  ;;  %vm848_vm3 = vc.u32 %v846_v36, %v842_v38  ;;  %v841_v46 = vshrl.u32 %v837_v24, 16 }
 0x1ac   :  { %v829_v42 = vadd.s32 %v827_v63, %v825_v39  ;;  %v849_v3 = vsel %vm848_vm3, 1, %v2048_v59  ;;  %v649_v48 = vsel %vm639_vm15, %v646_v5, %v648_v10  ;;  %v653_v29 = vsel %vm639_vm15, %v650_v7, %v652_v12 }
 0x1ad   :  { %v851_v49 = vadd.s32 %v849_v3, %v847_v44  ;;  %v679_v18 = vand.u32 65535, %v649_v48  ;;  %v680_v33 = vshrl.u32 %v649_v48, 16  ;;  %v821_v53 = vshrl.u32 %v816_v4, 16 }
 0x1ae   :  { %v830_v15 = vadd.s32 %v829_v42, %v819_v40  ;;  %v657_v17 = vand.u32 65535, %v653_v29  ;;  %v658_v60 = vshrl.u32 %v653_v29, 16  ;;  %v843_v52 = vshrl.u32 %v838_v6, 16 }
 0x1af   :  { %v2501_v54 = vadd.s32 %v846_v36, %v842_v38  ;;  %v852_v62 = vadd.s32 %v851_v49, %v841_v46  ;;  %v682_v16 = vmul.u32 %v680_v33, %v2404_v43  ;;  %v683_v5 = vmul.u32 %v679_v18, %v2442_v51 }
 0x1b0   :  { %v2504_v23 = vadd.s32 %v830_v15, %v821_v53  ;;  %v660_v25 = vmul.u32 %v658_v60, %v2404_v43  ;;  %v661_v2 = vmul.u32 %v657_v17, %v2442_v51  ;;  %v854_v4 = vmul.u32 %v2370_v11, %v2467_v0 }
 0x1b1   :  { %v853_v24 = vadd.s32 %v852_v62, %v843_v52  ;;  %v685_v10 = vshll.u32 %v682_v16, 16  ;;  %v643_v6 = vsel %vm641_vm13, %v2459_v61, 2102212464  ;;  %v659_v7 = vmul.u32 %v657_v17, %v2404_v43 }
 0x1b2   :  { %vm856_vm4 = vc.u32 %v2504_v23, %v2501_v54  ;;  %v663_v8 = vshll.u32 %v660_v25, 16  ;;  %v662_v45 = vmul.u32 %v658_v60, %v2442_v51  ;;  %v681_v13 = vmul.u32 %v679_v18, %v2404_v43 }
 0x1b3   :  { %v857_v9 = vadd.s32 1, %v853_v24  ;;  %v684_v19 = vmul.u32 %v680_v33, %v2442_v51  ;;  %v665_v20 = vshll.u32 %v661_v2, 16  ;;  %v687_v0 = vshll.u32 %v683_v5, 16 }
 0x1b4   :  { %vm667_vm5 = vc.u32 %v659_v7, %v663_v8  ;;  %v669_v11 = vadd.s32 %v663_v8, %v659_v7  ;;  %vm689_vm6 = vc.u32 %v681_v13, %v685_v10  ;;  %v691_v26 = vadd.s32 %v685_v10, %v681_v13 }
 0x1b5   :  { %v858_v21 = vsel %vm856_vm4, %v857_v9, %v853_v24  ;;  %v668_v32 = vsel %vm667_vm5, 1, %v2048_v59  ;;  %v690_v38 = vsel %vm689_vm6, 1, %v2048_v59  ;;  %v622_v36 = vshrl.u32 %v2045_v41, %v2415_v35 }
 0x1b6   :  { %v859_v61 = vadd.s32 %v858_v21, %v854_v4  ;;  %v670_v34 = vadd.s32 %v668_v32, %v662_v45  ;;  %vm671_vm7 = vc.u32 %v669_v11, %v665_v20  ;;  %v692_v51 = vadd.s32 %v690_v38, %v684_v19  ;;  %v921_v21 = vld [vmem:[#allocation4 + $0x28] sm:$0xff]  ;;  %v918_v32 = vld [vmem:[#allocation4 + $0x10] sm:$0xff] }
 0x1b7   :  { %v672_v43 = vsel %vm671_vm7, 1, %v2048_v59  ;;  %vm693_vm8 = vc.u32 %v691_v26, %v687_v0  ;;  %v664_v39 = vshrl.u32 %v660_v25, 16  ;;  %v644_v63 = vsel %vm640_vm14, %v2454_v57, %v643_v6  ;;  %1039 = vmatpush.msra.mxu0 %v921_v21 }
 0x1b8   :  { %v860_v12 = vadd.s32 536870912, %v859_v61  ;;  %v674_v27 = vadd.s32 %v672_v43, %v670_v34  ;;  %v694_v40 = vsel %vm693_vm8, 1, %v2048_v59  ;;  %v686_v44 = vshrl.u32 %v682_v16, 16  ;;  %v919_v34 = vld [vmem:[#allocation4 + $0x18] sm:$0xff] }
 0x1b9   :  { %v696_v42 = vadd.s32 %v694_v40, %v692_v51  ;;  %v642_v35 = vsel %vm638_vm12, %v622_v36, %v2452_v56  ;;  %v666_v3 = vshrl.u32 %v661_v2, 16  ;;  %v688_v49 = vshrl.u32 %v683_v5, 16  ;;  %1040 = vmatpush.msra.mxu0 %v919_v34 }
 0x1ba   :  { %v2529_v46 = vshrl.u32 %v860_v12, 30  ;;  %v675_v48 = vadd.s32 %v674_v27, %v664_v39  ;;  %v695_v53 = vadd.s32 %v691_v26, %v687_v0  ;;  %v645_v15 = vsel %vm639_vm15, %v642_v35, %v644_v63  ;;  %v920_v0 = vld [vmem:[#allocation4 + $0x20] sm:$0xff] }
 0x1bb   :  { %v697_v29 = vadd.s32 %v696_v42, %v686_v44  ;;  %v699_v62 = vmul.u32 %v2387_v30, %v645_v15  ;;  %v855_v6 = vadd.s32 %v2501_v54, %v2504_v23  ;;  %999 = vmatpush.msrb.mxu2 %v920_v0  ;;  %v916_v54 = vld [vmem:[#allocation4] sm:$0xff]  ;;  %v917_v23 = vld [vmem:[#allocation4 + $0x8] sm:$0xff]  ;;  %vm763_vm14 = vcmp.lt.s32.totalorder %v2351_v1, 0 }
 0x1bc   :  { %v862_v18 = vshll.u32 %v2529_v46, 30  ;;  %v676_v33 = vadd.s32 %v675_v48, %v666_v3  ;;  %1041 = vmatpush.msra.mxu0 %v917_v23  ;;  %vm2546_vm15 = vcmp.le.f32.partialorder %v761_v37, 0.7853982  ;;  %vm608_vm0 = vcmp.lt.s32.totalorder %v2355_v55, 0 }
 0x1bd   :  { %v698_v57 = vadd.s32 %v697_v29, %v688_v49  ;;  %1000 = vmatpush.msrb.mxu2 %v918_v32  ;;  %v885_v29 = vsub.s32 4, %v2529_v46  ;;  %vm2561_vm1 = vcmp.le.f32.partialorder %v606_v14, 0.7853982  ;;  %vm904_vm5 = vweird.f32 %v2351_v1 }
 0x1be   :  { %v863_v17 = vsub.s32 %v859_v61, %v862_v18  ;;  %vm701_vm9 = vc.u32 %v676_v33, %v695_v53  ;;  %v700_v40 = vadd.s32 %v695_v53, %v676_v33 }
 0x1bf   :  { %v702_v60 = vadd.s32 1, %v698_v57  ;;  %1001 = vmatpush.msrb.mxu2 %v916_v54  ;;  %v886_v37 = vsel %vm763_vm14, %v885_v29, %v2529_v46 }
 0x1c0   :  { %vm864_vm10 = vcmp.lt.s32.totalorder %v863_v17, 0  ;;  %v865_v52 = vsub.s32 0, %v863_v17 }
 0x1c1   :  { %v703_v56 = vsel %vm701_vm9, %v702_v60, %v698_v57  ;;  %vm749_vm9 = vweird.f32 %v2355_v55 }
 0x1c2   :  { %v866_v16 = vsel %vm864_vm10, %v865_v52, %v863_v17  ;;  %v704_v25 = vadd.s32 %v703_v56, %v699_v62 }
 0x1c3   :  { %v867_v2 = vclz %v866_v16 }
 0x1c4   :  { %v705_v5 = vadd.s32 536870912, %v704_v25 }
 0x1c5   :  { %v1934_v24 = vadd.s32 4294967294, %v867_v2 }
 0x1c6   :  { %v2538_v4 = vshrl.u32 %v705_v5, 30 }
 0x1c7   :  { %vm1935_vm11 = vcmp.lt.s32.totalorder %v1934_v24, 0 }
 0x1c8   :  { %v870_v10 = vsel %vm1935_vm11, 0, %v1934_v24  ;;  %v707_v47 = vshll.u32 %v2538_v4, 30 }
 0x1c9   :  { %v871_v7 = vsub.s32 32, %v870_v10  ;;  %v875_v8 = vsub.s32 4294967266, %v870_v10  ;;  %v872_v45 = vshll.u32 %v863_v17, %v870_v10 }
 0x1ca   :  { %v708_v9 = vsub.s32 %v704_v25, %v707_v47  ;;  %v888_v25 = vsel %vm2546_vm15, 0, %v886_v37  ;;  %v1439_v37 = vld [vmem:[#allocation6 + $0x1f8] sm:$0xff] }
 0x1cb   :  { %v873_v30 = vshrl.u32 %v855_v6, %v871_v7  ;;  %v876_v13 = vadd.s32 127, %v875_v8  ;;  %v905_v7 = vadd.s32 3, %v888_v25  ;;  %v730_v8 = vsub.s32 4, %v2538_v4  ;;  %1506 = vmatpush.msrb.mxu1 %v1439_v37  ;;  %v1435_v25 = vld [vmem:[#allocation6 + $0x1d8] sm:$0xff]  ;;  %v1390_v37 = vld [vmem:[#allocation6 + $0x70] sm:$0xff] }
 0x1cc   :  { %vm709_vm12 = vcmp.lt.s32.totalorder %v708_v9, 0  ;;  %v710_v19 = vsub.s32 0, %v708_v9 }
 0x1cd   :  { %v874_v20 = vor.u32 %v873_v30, %v872_v45  ;;  %v877_v11 = vshll.u32 %v876_v13, 23  ;;  %v906_v0 = vand.u32 3, %v905_v7  ;;  %v731_v21 = vsel %vm608_vm0, %v730_v8, %v2538_v4  ;;  %v1405_v7 = vld [vmem:[#allocation6 + $0xe8] sm:$0xff]  ;;  %v1403_v45 = vld [vmem:[#allocation6 + $0xd8] sm:$0xff] }
 0x1ce   :  { %v711_v26 = vsel %vm709_vm12, %v710_v19, %v708_v9  ;;  %v733_v23 = vsel %vm2561_vm1, 0, %v731_v21  ;;  %v1428_v21 = vld [vmem:[#allocation6 + $0x1a0] sm:$0xff] }
 0x1cf   :  { %v878_v61 = vor.u32 4788187, %v877_v11  ;;  %v712_v38 = vclz %v711_v26  ;;  %v881_v43 = vcvt.s32.f32 %v874_v20  ;;  %vm907_vm2 = vcmp.lt.s32.totalorder %v906_v0, 2 }
 0x1d0   :  { %vm908_vm3 = vcmp.eq.s32.totalorder %v906_v0, 0  ;;  %vm911_vm4 = vcmp.eq.s32.totalorder %v906_v0, 2 }
 0x1d1   :  { %v879_v36 = vand.u32 2147483647, %v878_v61  ;;  %v1931_v51 = vadd.s32 4294967294, %v712_v38 }
 0x1d3   :  { %v882_v12 = vmul.f32 %v881_v43, %v879_v36  ;;  %vm1932_vm13 = vcmp.lt.s32.totalorder %v1931_v51, 0 }
 0x1d4   :  { %v715_v39 = vsel %vm1932_vm13, 0, %v1931_v51 }
 0x1d5   :  { %v883_v27 = vxor.u32 2147483648, %v882_v12  ;;  %v716_v63 = vsub.s32 32, %v715_v39  ;;  %v720_v44 = vsub.s32 4294967266, %v715_v39  ;;  %v717_v3 = vshll.u32 %v708_v9, %v715_v39 }
 0x1d7   :  { %v884_v35 = vsel %vm763_vm14, %v883_v27, %v882_v12  ;;  %v718_v48 = vshrl.u32 %v700_v40, %v716_v63  ;;  %v721_v49 = vadd.s32 127, %v720_v44  ;;  %v750_v63 = vadd.s32 3, %v733_v23  ;;  %v1426_v23 = vld [vmem:[#allocation6 + $0x190] sm:$0xff] }
 0x1d8   :  { %v887_v18 = vsel %vm2546_vm15, %v2351_v1, %v884_v35 }
 0x1d9   :  { %v889_v33 = vmul.f32 %v887_v18, %v887_v18  ;;  %v719_v53 = vor.u32 %v718_v48, %v717_v3  ;;  %v722_v15 = vshll.u32 %v721_v49, 23  ;;  %v751_v48 = vand.u32 3, %v750_v63 }
 0x1db   :  { %v890_v57 = vmul.f32 -0.001358992, %v889_v33  ;;  %v897_v17 = vmul.f32 -0.00019511016, %v889_v33  ;;  %v723_v60 = vor.u32 4788187, %v722_v15  ;;  %v726_v16 = vcvt.s32.f32 %v719_v53 }
 0x1dc   :  { %vm753_vm6 = vcmp.eq.s32.totalorder %v751_v48, 0  ;;  %vm756_vm7 = vcmp.eq.s32.totalorder %v751_v48, 2  ;;  %vm752_vm8 = vcmp.lt.s32.totalorder %v751_v48, 2  ;;  %v1423_v48 = vld [vmem:[#allocation6 + $0x178] sm:$0xff] }
 0x1dd   :  { %v891_v52 = vadd.f32 0.041655596, %v890_v57  ;;  %v898_v62 = vadd.f32 0.008332121, %v897_v17  ;;  %v724_v56 = vand.u32 2147483647, %v723_v60 }
 0x1de   :  { %v980_v57 = vld [vmem:[%s3071_s6] sm:$0x3]  ;;  %v1438_v60 = vld [vmem:[#allocation6 + $0x1f0] sm:$0xff] }
 0x1df   :  { %v892_v2 = vmul.f32 %v891_v52, %v889_v33  ;;  %v899_v5 = vmul.f32 %v898_v62, %v889_v33  ;;  %v727_v24 = vmul.f32 %v726_v16, %v724_v56  ;;  %v983_v17 = vperm.slane %v980_v57, 1  ;;  %v1436_v52 = vld [vmem:[#allocation6 + $0x1e0] sm:$0xff]  ;;  %1466 = vmatpush.msra.mxu3 %v1438_v60  ;;  %v1437_v62 = vld [vmem:[#allocation6 + $0x1e8] sm:$0xff]  ;;  %v1434_v56 = vld [vmem:[#allocation6 + $0x1d0] sm:$0xff] }
 0x1e0   :  { %1507 = vmatpush.msrb.mxu1 %v1437_v62  ;;  %v1418_v62 = vld [vmem:[#allocation6 + $0x150] sm:$0xff] }
 0x1e1   :  { %v893_v10 = vadd.f32 -0.4999988, %v892_v2  ;;  %v900_v47 = vadd.f32 -0.16666654, %v899_v5  ;;  %v728_v6 = vxor.u32 2147483648, %v727_v24  ;;  %v1406_v2 = vld [vmem:[#allocation6 + $0xf0] sm:$0xff]  ;;  %1467 = vmatpush.msra.mxu3 %v1436_v52 }
 0x1e2   :  { %1446 = vmatpush.msra.mxu2 %v1406_v2  ;;  %1508 = vmatpush.msrb.mxu1 %v1435_v25  ;;  %v1391_v52 = vld [vmem:[#allocation6 + $0x78] sm:$0xff]  ;;  %v1388_v25 = vld [vmem:[#allocation6 + $0x60] sm:$0xff]  ;;  %v1389_v2 = vld [vmem:[#allocation6 + $0x68] sm:$0xff] }
 0x1e3   :  { %v894_v9 = vmul.f32 %v893_v10, %v889_v33  ;;  %v901_v46 = vmul.f32 %v900_v47, %v889_v33  ;;  %v729_v30 = vsel %vm608_vm0, %v728_v6, %v727_v24  ;;  %v1404_v24 = vld [vmem:[#allocation6 + $0xe0] sm:$0xff]  ;;  %v1433_v6 = vld [vmem:[#allocation6 + $0x1c8] sm:$0xff]  ;;  %1468 = vmatpush.msra.mxu3 %v1434_v56  ;;  %v1419_v56 = vld [vmem:[#allocation6 + $0x158] sm:$0xff] }
 0x1e4   :  { %v732_v13 = vsel %vm2561_vm1, %v2355_v55, %v729_v30  ;;  %v1407_v55 = vld [vmem:[#allocation6 + $0xf8] sm:$0xff]  ;;  %v1432_v47 = vld [vmem:[#allocation6 + $0x1c0] sm:$0xff]  ;;  %1447 = vmatpush.msra.mxu2 %v1404_v24  ;;  %v1430_v30 = vld [vmem:[#allocation6 + $0x1b0] sm:$0xff]  ;;  %1509 = vmatpush.msrb.mxu1 %v1433_v6 }
 0x1e5   :  { %v895_v19 = vadd.f32 1.0, %v894_v9  ;;  %v902_v20 = vadd.f32 1.0, %v901_v46  ;;  %v734_v11 = vmul.f32 %v732_v13, %v732_v13  ;;  %1486 = vmatpush.msrb.mxu0 %v1407_v55  ;;  %v982_v9 = vperm.slane %v980_v57, 0  ;;  %v1402_v46 = vld [vmem:[#allocation6 + $0xd0] sm:$0xff]  ;;  %1469 = vmatpush.msra.mxu3 %v1432_v47  ;;  %v1416_v6 = vld [vmem:[#allocation6 + $0x140] sm:$0xff] }
 0x1e6   :  { %1448 = vmatpush.msra.mxu2 %v1402_v46 }
 0x1e7   :  { %v903_v32 = vmul.f32 %v902_v20, %v887_v18  ;;  %v912_v26 = vxor.u32 2147483648, %v895_v19  ;;  %v735_v61 = vmul.f32 -0.001358992, %v734_v11  ;;  %v742_v34 = vmul.f32 -0.00019511016, %v734_v11  ;;  %1487 = vmatpush.msrb.mxu0 %v1405_v7  ;;  %v1400_v20 = vld [vmem:[#allocation6 + $0xc0] sm:$0xff]  ;;  %1470 = vmatpush.msra.mxu3 %v1430_v30 }
 0x1e8   :  { %1449 = vmatpush.msra.mxu2 %v1400_v20  ;;  %v1417_v7 = vld [vmem:[#allocation6 + $0x148] sm:$0xff]  ;;  %v1386_v30 = vld [vmem:[#allocation6 + $0x50] sm:$0xff] }
 0x1e9   :  { %v909_v38 = vxor.u32 2147483648, %v903_v32  ;;  %v736_v14 = vadd.f32 0.041655596, %v735_v61  ;;  %v743_v54 = vadd.f32 0.008332121, %v742_v34  ;;  %v913_v43 = vsel %vm911_vm4, %v912_v26, %v903_v32  ;;  %1488 = vmatpush.msrb.mxu0 %v1403_v45  ;;  %v1429_v32 = vld [vmem:[#allocation6 + $0x1a8] sm:$0xff]  ;;  %1471 = vmatpush.msra.mxu3 %v1428_v21 }
 0x1ea   :  { %v1414_v20 = vld [vmem:[#allocation6 + $0x130] sm:$0xff] }
 0x1eb   :  { %v910_v36 = vsel %vm908_vm3, %v895_v19, %v909_v38  ;;  %v737_v51 = vmul.f32 %v736_v14, %v734_v11  ;;  %v744_v12 = vmul.f32 %v743_v54, %v734_v11  ;;  %v1398_v38 = vld [vmem:[#allocation6 + $0xb0] sm:$0xff]  ;;  %v1399_v14 = vld [vmem:[#allocation6 + $0xb8] sm:$0xff]  ;;  %1472 = vmatpush.msra.mxu3 %v1426_v23 }
 0x1ec   :  { %v914_v4 = vsel %vm907_vm2, %v910_v36, %v913_v43  ;;  %v1427_v36 = vld [vmem:[#allocation6 + $0x198] sm:$0xff]  ;;  %1450 = vmatpush.msra.mxu2 %v1398_v38 }
 0x1ed   :  { %v915_v39 = vsel %vm904_vm5, nan, %v914_v4  ;;  %v738_v27 = vadd.f32 -0.4999988, %v737_v51  ;;  %v745_v40 = vadd.f32 -0.16666654, %v744_v12  ;;  %v1396_v12 = vld [vmem:[#allocation6 + $0xa0] sm:$0xff] }
 0x1ee   :  { %1022 = vmatmul.f32.vlgmr.msrb.gmra.mxu3 %v915_v39  ;;  %1062 = vmatmul.f32.vlgmr.msra.gmra.mxu1 %v915_v39  ;;  %v1397_v4 = vld [vmem:[#allocation6 + $0xa8] sm:$0xff] }
 0x1ef   :  { %v739_v44 = vmul.f32 %v738_v27, %v734_v11  ;;  %v746_v42 = vmul.f32 %v745_v40, %v734_v11  ;;  %v1401_v11 = vld [vmem:[#allocation6 + $0xc8] sm:$0xff]  ;;  %v1424_v27 = vld [vmem:[#allocation6 + $0x180] sm:$0xff]  ;;  %1451 = vmatpush.msra.mxu2 %v1396_v12 }
 0x1f0   :  { %1489 = vmatpush.msrb.mxu0 %v1401_v11  ;;  %v1425_v40 = vld [vmem:[#allocation6 + $0x188] sm:$0xff]  ;;  %1473 = vmatpush.msra.mxu3 %v1424_v27  ;;  %v1415_v11 = vld [vmem:[#allocation6 + $0x138] sm:$0xff] }
 0x1f1   :  { %v740_v35 = vadd.f32 1.0, %v739_v44  ;;  %v747_v3 = vadd.f32 1.0, %v746_v42  ;;  %v1394_v42 = vld [vmem:[#allocation6 + $0x90] sm:$0xff]  ;;  %v1413_v12 = vld [vmem:[#allocation6 + $0x128] sm:$0xff] }
 0x1f2   :  { %1490 = vmatpush.msrb.mxu0 %v1399_v14  ;;  %1452 = vmatpush.msra.mxu2 %v1394_v42  ;;  %v1384_v14 = vld [vmem:[#allocation6 + $0x40] sm:$0xff] }
 0x1f3   :  { %v748_v49 = vmul.f32 %v747_v3, %v732_v13  ;;  %v757_v29 = vxor.u32 2147483648, %v740_v35  ;;  %v1431_v13 = vld [vmem:[#allocation6 + $0x1b8] sm:$0xff]  ;;  %v1422_v3 = vld [vmem:[#allocation6 + $0x170] sm:$0xff] }
 0x1f4   :  { %1510 = vmatpush.msrb.mxu1 %v1431_v13  ;;  %1491 = vmatpush.msrb.mxu0 %v1397_v4  ;;  %v1387_v13 = vld [vmem:[#allocation6 + $0x58] sm:$0xff] }
 0x1f5   :  { %v754_v18 = vxor.u32 2147483648, %v748_v49  ;;  %v758_v1 = vsel %vm756_vm7, %v757_v29, %v748_v49  ;;  %v1392_v29 = vld [vmem:[#allocation6 + $0x80] sm:$0xff]  ;;  %1474 = vmatpush.msra.mxu3 %v1422_v3 }
 0x1f6   :  { %1511 = vmatpush.msrb.mxu1 %v1429_v32  ;;  %1453 = vmatpush.msra.mxu2 %v1392_v29  ;;  %v1411_v29 = vld [vmem:[#allocation6 + $0x118] sm:$0xff] }
 0x1f7   :  { %v755_v33 = vsel %vm753_vm6, %v740_v35, %v754_v18  ;;  %v1395_v35 = vld [vmem:[#allocation6 + $0x98] sm:$0xff]  ;;  %v1393_v18 = vld [vmem:[#allocation6 + $0x88] sm:$0xff] }
 0x1f8   :  { %v759_v53 = vsel %vm752_vm8, %v755_v33, %v758_v1  ;;  %1512 = vmatpush.msrb.mxu1 %v1427_v36  ;;  %1492 = vmatpush.msrb.mxu0 %v1395_v35 }
 0x1f9   :  { %v760_v15 = vsel %vm749_vm9, nan, %v759_v53  ;;  %v1420_v53 = vld [vmem:[#allocation6 + $0x160] sm:$0xff]  ;;  %1454 = vmatpush.msra.mxu2 %v1390_v37 }
 0x1fa   :  { %1002 = vmatmul.f32.vlgmr.msrb.gmra.mxu2 %v760_v15  ;;  %1042 = vmatmul.f32.vlgmr.msra.gmra.mxu0 %v760_v15  ;;  %v1421_v15 = vld [vmem:[#allocation6 + $0x168] sm:$0xff]  ;;  %v1408_v37 = vld [vmem:[#allocation6 + $0x100] sm:$0xff] }
 0x1fb   :  { %1513 = vmatpush.msrb.mxu1 %v1425_v40  ;;  %1493 = vmatpush.msrb.mxu0 %v1393_v18 }
 0x1fc   :  { %1475 = vmatpush.msra.mxu3 %v1420_v53  ;;  %1455 = vmatpush.msra.mxu2 %v1388_v25 }
 0x1fd   :  { %1514 = vmatpush.msrb.mxu1 %v1423_v48  ;;  %1494 = vmatpush.msrb.mxu0 %v1391_v52  ;;  %v1409_v52 = vld [vmem:[#allocation6 + $0x108] sm:$0xff] }
 0x1fe   :  { %1476 = vmatpush.msra.mxu3 %v1418_v62  ;;  %1456 = vmatpush.msra.mxu2 %v1386_v30 }
 0x1ff   :  { %1515 = vmatpush.msrb.mxu1 %v1421_v15  ;;  %1495 = vmatpush.msrb.mxu0 %v1389_v2 }
 0x200   :  { %1477 = vmatpush.msra.mxu3 %v1416_v6  ;;  %1457 = vmatpush.msra.mxu2 %v1384_v14 }
 0x201   :  { %1516 = vmatpush.msrb.mxu1 %v1419_v56  ;;  %1496 = vmatpush.msrb.mxu0 %v1387_v13 }
 0x202   :  { %1478 = vmatpush.msra.mxu3 %v1414_v20 }
 0x203   :  { %1517 = vmatpush.msrb.mxu1 %v1417_v7 }
 0x205   :  { %1518 = vmatpush.msrb.mxu1 %v1415_v11 }
 0x207   :  { %1519 = vmatpush.msrb.mxu1 %v1413_v12 }
 0x209   :  { %1520 = vmatpush.msrb.mxu1 %v1411_v29 }
 0x20b   :  { %1521 = vmatpush.msrb.mxu1 %v1409_v52 }
 0x26b   :  { %v1063_v10 = vpop.f32.mrf.mxu1 }
 0x271   :  { %v1023_v54 = vpop.f32.mrf.mxu3 }
 0x277   :  { %v1043_v16 = vpop.f32.mrf.mxu0 }
 0x278   :  { %v1044_v5 = vadd.f32 %v1043_v16, %v983_v17 }
 0x27a   :  { %v2576_v8 = vadd.f32 %v1063_v10, %v1044_v5 }
 0x27c   :  { %v1224_v19 = vand.u32 2139095040, %v2576_v8  ;;  %v1221_v26 = vand.u32 2147483647, %v2576_v8 }
 0x27d   :  { %v1003_v0 = vpop.f32.mrf.mxu2 }
 0x27e   :  { %v1225_v61 = vshrl.u32 %v1224_v19, 23  ;;  %v1004_v34 = vadd.f32 %v1003_v0, %v982_v9  ;;  %v1228_v39 = vand.u32 8388607, %v1221_v26 }
 0x280   :  { %v1939_v43 = vadd.s32 4294967169, %v1225_v61  ;;  %v2580_v51 = vadd.f32 %v1023_v54, %v1004_v34  ;;  %v1229_v33 = vor.u32 8388608, %v1228_v39  ;;  %v1385_v54 = vld [vmem:[#allocation6 + $0x48] sm:$0xff] }
 0x281   :  { %1497 = vmatpush.msrb.mxu0 %v1385_v54 }
 0x282   :  { %v1231_v63 = vadd.s32 1, %v1939_v43  ;;  %v1069_v44 = vand.u32 2139095040, %v2580_v51  ;;  %v2587_v55 = vshll.u32 %v1229_v33, 8  ;;  %v1066_v5 = vand.u32 2147483647, %v2580_v51  ;;  %v1412_v43 = vld [vmem:[#allocation6 + $0x120] sm:$0xff] }
 0x283   :  { %1479 = vmatpush.msra.mxu3 %v1412_v43 }
 0x284   :  { %vm1232_vm10 = vcmp.gt.s32.totalorder %v1231_v63, 0  ;;  %v1070_v49 = vshrl.u32 %v1069_v44, 23  ;;  %v1383_v44 = vld [vmem:[#allocation6 + $0x38] sm:$0xff]  ;;  %v2640_v2 = vand.u32 8388607, %v1066_v5 }
 0x285   :  { %v1233_v1 = vsel %vm1232_vm10, %v1231_v63, 0  ;;  %v1382_v63 = vld [vmem:[#allocation6 + $0x30] sm:$0xff]  ;;  %1498 = vmatpush.msrb.mxu0 %v1383_v44 }
 0x286   :  { %v2585_v57 = vshrl.u32 %v1233_v1, 5  ;;  %v1235_v17 = vand.u32 31, %v1233_v1  ;;  %v1936_v60 = vadd.s32 4294967169, %v1070_v49  ;;  %v1410_v49 = vld [vmem:[#allocation6 + $0x110] sm:$0xff]  ;;  %1458 = vmatpush.msra.mxu2 %v1382_v63 }
 0x287   :  { %1480 = vmatpush.msra.mxu3 %v1410_v49 }
 0x288   :  { %v1236_v16 = vsub.s32 32, %v1235_v17  ;;  %v1247_v24 = vshll.u32 %v2042_v22, %v1235_v17  ;;  %v1250_v10 = vshll.u32 %v2043_v28, %v1235_v17  ;;  %v1076_v47 = vadd.s32 1, %v1936_v60 }
 0x289   :  { %v1238_v9 = vshll.u32 %v2045_v41, %v1235_v17  ;;  %vm1256_vm11 = vcmp.lt.s32.totalorder %v2585_v57, 4  ;;  %v1241_v19 = vshll.u32 %v2046_v50, %v1235_v17  ;;  %v1244_v23 = vshll.u32 %v2047_v58, %v1235_v17  ;;  %1481 = vmatpush.msra.mxu3 %v1408_v37 }
 0x28a   :  { %v1248_v46 = vshrl.u32 %v2043_v28, %v1236_v16  ;;  %v1251_v45 = vshrl.u32 %v2044_v31, %v1236_v16  ;;  %vm1077_vm12 = vcmp.gt.s32.totalorder %v1076_v47, 0  ;;  %v1239_v0 = vshrl.u32 %v2046_v50, %v1236_v16 }
 0x28b   :  { %v1242_v21 = vshrl.u32 %v2047_v58, %v1236_v16  ;;  %v1245_v32 = vshrl.u32 %v2042_v22, %v1236_v16  ;;  %v1078_v38 = vsel %vm1077_vm12, %v1076_v47, 0  ;;  %v1237_v4 = vshrl.u32 %v2045_v41, %v1236_v16 }
 0x28c   :  { %v1249_v61 = vor.u32 %v1248_v46, %v1247_v24  ;;  %v1252_v34 = vor.u32 %v1251_v45, %v1250_v10  ;;  %v2601_v36 = vand.u32 31, %v1078_v38  ;;  %v1240_v39 = vor.u32 %v1239_v0, %v1238_v9 }
 0x28d   :  { %v1243_v27 = vor.u32 %v1242_v21, %v1241_v19  ;;  %v1246_v42 = vor.u32 %v1245_v32, %v1244_v23  ;;  %vm1253_vm13 = vcmp.lt.s32.totalorder %v2585_v57, 1  ;;  %vm1254_vm14 = vcmp.lt.s32.totalorder %v2585_v57, 2 }
 0x28e   :  { %v1262_v40 = vsel %vm1256_vm11, %v1249_v61, 920167782  ;;  %v1266_v35 = vsel %vm1256_vm11, %v1252_v34, 1326507024  ;;  %v2611_v3 = vsub.s32 32, %v2601_v36  ;;  %v1092_v48 = vshll.u32 %v2042_v22, %v2601_v36 }
 0x28f   :  { %vm1255_vm15 = vcmp.lt.s32.totalorder %v2585_v57, 3  ;;  %v1095_v18 = vshll.u32 %v2043_v28, %v2601_v36  ;;  %v1258_v33 = vsel %vm1256_vm11, %v1246_v42, 2102212464  ;;  %v1261_v1 = vsel %vm1253_vm13, %v1240_v39, %v1243_v27 }
 0x290   :  { %v1263_v53 = vsel %vm1255_vm15, %v1246_v42, %v1262_v40  ;;  %v2624_v15 = vshrl.u32 %v1078_v38, 5  ;;  %v1093_v17 = vshrl.u32 %v2043_v28, %v2611_v3  ;;  %v1096_v60 = vshrl.u32 %v2044_v31, %v2611_v3 }
 0x291   :  { %v1257_v62 = vsel %vm1253_vm13, %v1237_v4, %v1240_v39  ;;  %v1259_v56 = vsel %vm1255_vm15, %v1243_v27, %v1258_v33  ;;  %v1264_v16 = vsel %vm1254_vm14, %v1261_v1, %v1263_v53  ;;  %v1265_v25 = vsel %vm1253_vm13, %v1243_v27, %v1246_v42 }
 0x292   :  { %v1094_v24 = vor.u32 %v1093_v17, %v1092_v48  ;;  %v1097_v10 = vor.u32 %v1096_v60, %v1095_v18  ;;  %v1267_v47 = vsel %vm1255_vm15, %v1249_v61, %v1266_v35  ;;  %v1294_v6 = vand.u32 65535, %v1264_v16 }
 0x293   :  { %v1268_v7 = vsel %vm1254_vm14, %v1265_v25, %v1267_v47  ;;  %v1270_v9 = vand.u32 65535, %v2587_v55  ;;  %v1271_v46 = vshrl.u32 %v2587_v55, 16  ;;  %v1295_v45 = vshrl.u32 %v1264_v16, 16 }
 0x294   :  { %vm1101_vm0 = vcmp.lt.s32.totalorder %v2624_v15, 4  ;;  %v1272_v30 = vand.u32 65535, %v1268_v7  ;;  %v1273_v13 = vshrl.u32 %v1268_v7, 16  ;;  %v2651_v19 = vsel %vm1254_vm14, %v1257_v62, %v1259_v56 }
 0x295   :  { %v1297_v20 = vmul.u32 %v1295_v45, %v1270_v9  ;;  %v1298_v11 = vmul.u32 %v1294_v6, %v1271_v46  ;;  %v1074_v0 = vor.u32 8388608, %v2640_v2  ;;  %v1107_v21 = vsel %vm1101_vm0, %v1094_v24, 920167782 }
 0x296   :  { %v1111_v32 = vsel %vm1101_vm0, %v1097_v10, 1326507024  ;;  %v1275_v61 = vmul.u32 %v1273_v13, %v1270_v9  ;;  %v1276_v34 = vmul.u32 %v1272_v30, %v1271_v46  ;;  %v1274_v38 = vmul.u32 %v1272_v30, %v1270_v9 }
 0x297   :  { %v1296_v14 = vmul.u32 %v1294_v6, %v1270_v9  ;;  %v1299_v54 = vmul.u32 %v1295_v45, %v1271_v46  ;;  %v1300_v23 = vshll.u32 %v1297_v20, 16  ;;  %v1277_v43 = vmul.u32 %v1273_v13, %v1271_v46 }
 0x298   :  { %v1278_v57 = vshll.u32 %v1275_v61, 16  ;;  %v1301_v12 = vshrl.u32 %v1297_v20, 16  ;;  %v1302_v4 = vshll.u32 %v1298_v11, 16  ;;  %v1280_v39 = vshll.u32 %v1276_v34, 16 }
 0x299   :  { %vm1304_vm1 = vc.u32 %v1296_v14, %v1300_v23  ;;  %v1306_v27 = vadd.s32 %v1300_v23, %v1296_v14  ;;  %v1083_v40 = vshll.u32 %v2045_v41, %v2601_v36  ;;  %v1084_v42 = vshrl.u32 %v2046_v50, %v2611_v3 }
 0x29a   :  { %vm1282_vm2 = vc.u32 %v1274_v38, %v1278_v57  ;;  %v1284_v63 = vadd.s32 %v1278_v57, %v1274_v38  ;;  %v1305_v44 = vsel %vm1304_vm1, 1, %v2048_v59  ;;  %v1303_v48 = vshrl.u32 %v1298_v11, 16 }
 0x29b   :  { %v1283_v35 = vsel %vm1282_vm2, 1, %v2048_v59  ;;  %v1307_v49 = vadd.s32 %v1305_v44, %v1299_v54  ;;  %vm1308_vm3 = vc.u32 %v1306_v27, %v1302_v4  ;;  %v2665_v33 = vor.u32 %v1084_v42, %v1083_v40 }
 0x29c   :  { %v1285_v29 = vadd.s32 %v1283_v35, %v1277_v43  ;;  %vm1286_vm4 = vc.u32 %v1284_v63, %v1280_v39  ;;  %v1309_v18 = vsel %vm1308_vm3, 1, %v2048_v59  ;;  %v1086_v17 = vshll.u32 %v2046_v50, %v2601_v36 }
 0x29d   :  { %v1287_v1 = vsel %vm1286_vm4, 1, %v2048_v59  ;;  %v1311_v53 = vadd.s32 %v1309_v18, %v1307_v49  ;;  %v1087_v60 = vshrl.u32 %v2047_v58, %v2611_v3  ;;  %v1279_v37 = vshrl.u32 %v1275_v61, 16 }
 0x29e   :  { %v1289_v52 = vadd.s32 %v1287_v1, %v1285_v29  ;;  %v1089_v62 = vshll.u32 %v2047_v58, %v2601_v36  ;;  %v1090_v56 = vshrl.u32 %v2042_v22, %v2611_v3  ;;  %v1281_v16 = vshrl.u32 %v1276_v34, 16 }
 0x29f   :  { %v1312_v25 = vadd.s32 %v1311_v53, %v1301_v12  ;;  %v2676_v2 = vor.u32 %v1087_v60, %v1086_v17  ;;  %vm1100_vm5 = vcmp.lt.s32.totalorder %v2624_v15, 3  ;;  %vm1098_vm6 = vcmp.lt.s32.totalorder %v2624_v15, 1 }
 0x2a0   :  { %v1290_v10 = vadd.s32 %v1289_v52, %v1279_v37  ;;  %v1091_v47 = vor.u32 %v1090_v56, %v1089_v62  ;;  %v1112_v6 = vsel %vm1100_vm5, %v1094_v24, %v1111_v32  ;;  %v2682_v7 = vadd.s32 %v1306_v27, %v1302_v4 }
 0x2a1   :  { %v1313_v9 = vadd.s32 %v1312_v25, %v1303_v48  ;;  %v1106_v36 = vsel %vm1098_vm6, %v2665_v33, %v2676_v2  ;;  %v2688_v46 = vshll.u32 %v1074_v0, 8  ;;  %vm1099_vm7 = vcmp.lt.s32.totalorder %v2624_v15, 2 }
 0x2a2   :  { %v2690_v45 = vadd.s32 %v1290_v10, %v1281_v16  ;;  %v1108_v30 = vsel %vm1100_vm5, %v1091_v47, %v1107_v21  ;;  %v1110_v24 = vsel %vm1098_vm6, %v2676_v2, %v1091_v47  ;;  %v1314_v0 = vmul.u32 %v2587_v55, %v2651_v19 }
 0x2a3   :  { %v1317_v13 = vadd.s32 1, %v1313_v9  ;;  %v1109_v20 = vsel %vm1099_vm7, %v1106_v36, %v1108_v30  ;;  %v1113_v11 = vsel %vm1099_vm7, %v1110_v24, %v1112_v6  ;;  %v1115_v32 = vand.u32 65535, %v2688_v46 }
 0x2a4   :  { %vm1316_vm8 = vc.u32 %v2690_v45, %v2682_v7  ;;  %v1116_v61 = vshrl.u32 %v2688_v46, 16  ;;  %v1117_v34 = vand.u32 65535, %v1113_v11  ;;  %v1118_v38 = vshrl.u32 %v1113_v11, 16 }
 0x2a5   :  { %v1318_v21 = vsel %vm1316_vm8, %v1317_v13, %v1313_v9  ;;  %v1139_v54 = vand.u32 65535, %v1109_v20  ;;  %v1140_v23 = vshrl.u32 %v1109_v20, 16  ;;  %v1103_v62 = vsel %vm1101_vm0, %v1091_v47, 2102212464 }
 0x2a6   :  { %v1319_v14 = vadd.s32 %v1318_v21, %v1314_v0  ;;  %v1120_v43 = vmul.u32 %v1118_v38, %v1115_v32  ;;  %v1121_v57 = vmul.u32 %v1117_v34, %v1116_v61  ;;  %v1119_v27 = vmul.u32 %v1117_v34, %v1115_v32 }
 0x2a7   :  { %v1142_v4 = vmul.u32 %v1140_v23, %v1115_v32  ;;  %v1143_v39 = vmul.u32 %v1139_v54, %v1116_v61  ;;  %v1122_v40 = vmul.u32 %v1118_v38, %v1116_v61  ;;  %v1141_v63 = vmul.u32 %v1139_v54, %v1115_v32 }
 0x2a8   :  { %v1320_v12 = vadd.s32 536870912, %v1319_v14  ;;  %v1123_v55 = vshll.u32 %v1120_v43, 16  ;;  %v1125_v42 = vshll.u32 %v1121_v57, 16  ;;  %v1144_v48 = vmul.u32 %v1140_v23, %v1116_v61 }
 0x2a9   :  { %v1145_v44 = vshll.u32 %v1142_v4, 16  ;;  %v1147_v18 = vshll.u32 %v1143_v39, 16  ;;  %v1124_v56 = vshrl.u32 %v1120_v43, 16  ;;  %v1082_v10 = vshrl.u32 %v2045_v41, %v2611_v3 }
 0x2aa   :  { %v2708_v19 = vshrl.u32 %v1320_v12, 30  ;;  %vm1127_vm9 = vc.u32 %v1119_v27, %v1123_v55  ;;  %v1129_v35 = vadd.s32 %v1123_v55, %v1119_v27  ;;  %v1126_v9 = vshrl.u32 %v1121_v57, 16 }
 0x2ab   :  { %v1128_v29 = vsel %vm1127_vm9, 1, %v2048_v59  ;;  %vm1149_vm10 = vc.u32 %v1141_v63, %v1145_v44  ;;  %v1151_v17 = vadd.s32 %v1145_v44, %v1141_v63  ;;  %v1146_v30 = vshrl.u32 %v1142_v4, 16  ;;  %v1380_v63 = vld [vmem:[#allocation6 + $0x20] sm:$0xff]  ;;  %v1381_v44 = vld [vmem:[#allocation6 + $0x28] sm:$0xff] }
 0x2ac   :  { %v1322_v49 = vshll.u32 %v2708_v19, 30  ;;  %v1130_v1 = vadd.s32 %v1128_v29, %v1122_v40  ;;  %vm1131_vm11 = vc.u32 %v1129_v35, %v1125_v42  ;;  %v1150_v53 = vsel %vm1149_vm10, 1, %v2048_v59  ;;  %v1378_v42 = vld [vmem:[#allocation6 + $0x10] sm:$0xff]  ;;  %1459 = vmatpush.msra.mxu2 %v1380_v63  ;;  %1499 = vmatpush.msrb.mxu0 %v1381_v44 }
 0x2ad   :  { %v1132_v37 = vsel %vm1131_vm11, 1, %v2048_v59  ;;  %v1152_v52 = vadd.s32 %v1150_v53, %v1144_v48  ;;  %vm1153_vm12 = vc.u32 %v1151_v17, %v1147_v18  ;;  %v1102_v20 = vsel %vm1098_vm6, %v1082_v10, %v2665_v33 }
 0x2ae   :  { %v1323_v60 = vsub.s32 %v1319_v14, %v1322_v49  ;;  %v1134_v16 = vadd.s32 %v1132_v37, %v1130_v1  ;;  %v1154_v6 = vsel %vm1153_vm12, 1, %v2048_v59  ;;  %v1104_v47 = vsel %vm1100_vm5, %v2676_v2, %v1103_v62  ;;  %1460 = vmatpush.msra.mxu2 %v1378_v42 }
 0x2af   :  { %v1156_v24 = vadd.s32 %v1154_v6, %v1152_v52  ;;  %v1148_v32 = vshrl.u32 %v1143_v39, 16  ;;  %v1155_v3 = vadd.s32 %v1151_v17, %v1147_v18  ;;  %v1105_v34 = vsel %vm1099_vm7, %v1102_v20, %v1104_v47 }
 0x2b0   :  { %vm1324_vm13 = vcmp.lt.s32.totalorder %v1323_v60, 0  ;;  %v1325_v25 = vsub.s32 0, %v1323_v60  ;;  %v1135_v36 = vadd.s32 %v1134_v16, %v1124_v56  ;;  %v1159_v33 = vmul.u32 %v2688_v46, %v1105_v34  ;;  %v1379_v46 = vld [vmem:[#allocation6 + $0x18] sm:$0xff] }
 0x2b1   :  { %v1157_v21 = vadd.s32 %v1156_v24, %v1146_v30  ;;  %v1315_v23 = vadd.s32 %v2682_v7, %v2690_v45  ;;  %v1376_v7 = vld [vmem:[#allocation6] sm:$0xff]  ;;  %v1377_v45 = vld [vmem:[#allocation6 + $0x8] sm:$0xff]  ;;  %1500 = vmatpush.msrb.mxu0 %v1379_v46  ;;  %vm1223_vm1 = vcmp.lt.s32.totalorder %v2576_v8, 0  ;;  %vm2736_vm2 = vcmp.le.f32.partialorder %v1221_v26, 0.7853982 }
 0x2b2   :  { %v1326_v13 = vsel %vm1324_vm13, %v1325_v25, %v1323_v60  ;;  %v1136_v0 = vadd.s32 %v1135_v36, %v1126_v9  ;;  %1461 = vmatpush.msra.mxu2 %v1376_v7  ;;  %v1345_v16 = vsub.s32 4, %v2708_v19  ;;  %vm1068_vm6 = vcmp.lt.s32.totalorder %v2580_v51, 0 }
 0x2b3   :  { %v1327_v11 = vclz %v1326_v13  ;;  %v1158_v38 = vadd.s32 %v1157_v21, %v1148_v32  ;;  %1501 = vmatpush.msrb.mxu0 %v1377_v45  ;;  %vm1364_vm8 = vweird.f32 %v2576_v8  ;;  %vm2751_vm9 = vcmp.le.f32.partialorder %v1066_v5, 0.7853982 }
 0x2b4   :  { %vm1161_vm14 = vc.u32 %v1136_v0, %v1155_v3  ;;  %v1346_v30 = vsel %vm1223_vm1, %v1345_v16, %v2708_v19  ;;  %v1160_v20 = vadd.s32 %v1155_v3, %v1136_v0  ;;  %vm1209_vm13 = vweird.f32 %v2580_v51 }
 0x2b5   :  { %v1940_v61 = vadd.s32 4294967294, %v1327_v11  ;;  %v1162_v14 = vadd.s32 1, %v1158_v38  ;;  %v1348_v32 = vsel %vm2736_vm2, 0, %v1346_v30 }
 0x2b7   :  { %vm1941_vm15 = vcmp.lt.s32.totalorder %v1940_v61, 0  ;;  %v1163_v57 = vsel %vm1161_vm14, %v1162_v14, %v1158_v38 }
 0x2b8   :  { %v1330_v54 = vsel %vm1941_vm15, 0, %v1940_v61  ;;  %v1164_v12 = vadd.s32 %v1163_v57, %v1159_v33 }
 0x2b9   :  { %v1331_v2 = vsub.s32 32, %v1330_v54  ;;  %v1335_v43 = vsub.s32 4294967266, %v1330_v54  ;;  %v1332_v4 = vshll.u32 %v1323_v60, %v1330_v54 }
 0x2ba   :  { %v1165_v55 = vadd.s32 536870912, %v1164_v12 }
 0x2bb   :  { %v1333_v39 = vshrl.u32 %v1315_v23, %v1331_v2  ;;  %v1336_v27 = vadd.s32 127, %v1335_v43  ;;  %v1365_v23 = vadd.s32 3, %v1348_v32  ;;  %v1440_v32 = vld [vmem:[%s3073_s8] sm:$0x3] }
 0x2bc   :  { %v2730_v35 = vshrl.u32 %v1165_v55, 30 }
 0x2bd   :  { %v1334_v15 = vor.u32 %v1333_v39, %v1332_v4  ;;  %v1337_v40 = vshll.u32 %v1336_v27, 23  ;;  %v1366_v3 = vand.u32 3, %v1365_v23  ;;  %v1849_v23 = vld [vmem:[%s3074_s9 + $0x68] sm:$0xff] }
 0x2be   :  { %v1167_v49 = vshll.u32 %v2730_v35, 30 }
 0x2bf   :  { %v1338_v48 = vor.u32 4788187, %v1337_v40  ;;  %v1341_v18 = vcvt.s32.f32 %v1334_v15  ;;  %vm1368_vm4 = vcmp.eq.s32.totalorder %v1366_v3, 0  ;;  %vm1371_vm5 = vcmp.eq.s32.totalorder %v1366_v3, 2 }
 0x2c0   :  { %v1168_v1 = vsub.s32 %v1164_v12, %v1167_v49  ;;  %vm1367_vm7 = vcmp.lt.s32.totalorder %v1366_v3, 2  ;;  %v1847_v3 = vld [vmem:[%s3074_s9 + $0x58] sm:$0xff] }
 0x2c1   :  { %v1339_v29 = vand.u32 2147483647, %v1338_v48 }
 0x2c2   :  { %vm1169_vm0 = vcmp.lt.s32.totalorder %v1168_v1, 0  ;;  %v1170_v17 = vsub.s32 0, %v1168_v1 }
 0x2c3   :  { %v1342_v53 = vmul.f32 %v1341_v18, %v1339_v29  ;;  %v1190_v29 = vsub.s32 4, %v2730_v35 }
 0x2c4   :  { %v1171_v37 = vsel %vm1169_vm0, %v1170_v17, %v1168_v1 }
 0x2c5   :  { %v1343_v60 = vxor.u32 2147483648, %v1342_v53  ;;  %v1172_v56 = vclz %v1171_v37  ;;  %v1191_v5 = vsel %vm1068_vm6, %v1190_v29, %v2730_v35 }
 0x2c6   :  { %v1193_v37 = vsel %vm2751_vm9, 0, %v1191_v5 }
 0x2c7   :  { %v1344_v62 = vsel %vm1223_vm1, %v1343_v60, %v1342_v53  ;;  %v1937_v6 = vadd.s32 4294967294, %v1172_v56 }
 0x2c8   :  { %v1347_v25 = vsel %vm2736_vm2, %v2576_v8, %v1344_v62 }
 0x2c9   :  { %v1349_v10 = vmul.f32 %v1347_v25, %v1347_v25  ;;  %vm1938_vm3 = vcmp.lt.s32.totalorder %v1937_v6, 0 }
 0x2ca   :  { %v1175_v24 = vsel %vm1938_vm3, 0, %v1937_v6 }
 0x2cb   :  { %v1350_v9 = vmul.f32 -0.001358992, %v1349_v10  ;;  %v1357_v36 = vmul.f32 -0.00019511016, %v1349_v10  ;;  %v1176_v47 = vsub.s32 32, %v1175_v24  ;;  %v1180_v11 = vsub.s32 4294967266, %v1175_v24 }
 0x2cc   :  { %v1177_v38 = vshll.u32 %v1168_v1, %v1175_v24 }
 0x2cd   :  { %v1351_v26 = vadd.f32 0.041655596, %v1350_v9  ;;  %v1358_v13 = vadd.f32 0.008332121, %v1357_v36  ;;  %v1178_v34 = vshrl.u32 %v1160_v20, %v1176_v47  ;;  %v1181_v14 = vadd.s32 127, %v1180_v11 }
 0x2cf   :  { %v1352_v21 = vmul.f32 %v1351_v26, %v1349_v10  ;;  %v1359_v61 = vmul.f32 %v1358_v13, %v1349_v10  ;;  %v1179_v2 = vor.u32 %v1178_v34, %v1177_v38  ;;  %v1182_v43 = vshll.u32 %v1181_v14, 23  ;;  %v1866_v34 = vld [vmem:[%s3074_s9 + $0xf0] sm:$0xff] }
 0x2d0   :  { %v1850_v38 = vld [vmem:[%s3074_s9 + $0x70] sm:$0xff] }
 0x2d1   :  { %v1353_v54 = vadd.f32 -0.4999988, %v1352_v21  ;;  %v1360_v33 = vadd.f32 -0.16666654, %v1359_v61  ;;  %v1183_v12 = vor.u32 4788187, %v1182_v43  ;;  %v1186_v27 = vcvt.s32.f32 %v1179_v2 }
 0x2d2   :  { %v1443_v21 = vperm.slane %v1440_v32, 1  ;;  %v1867_v61 = vld [vmem:[%s3074_s9 + $0xf8] sm:$0xff]  ;;  %v1864_v43 = vld [vmem:[%s3074_s9 + $0xe0] sm:$0xff] }
 0x2d3   :  { %v1354_v19 = vmul.f32 %v1353_v54, %v1349_v10  ;;  %v1361_v57 = vmul.f32 %v1360_v33, %v1349_v10  ;;  %v1184_v39 = vand.u32 2147483647, %v1183_v12  ;;  %1892 = vmatpush.msrb.mxu3 %v1867_v61  ;;  %v1865_v54 = vld [vmem:[%s3074_s9 + $0xe8] sm:$0xff]  ;;  %v1848_v12 = vld [vmem:[%s3074_s9 + $0x60] sm:$0xff] }
 0x2d4   :  { %v1840_v61 = vld [vmem:[%s3074_s9 + $0x20] sm:$0xff] }
 0x2d5   :  { %v1355_v4 = vadd.f32 1.0, %v1354_v19  ;;  %v1362_v0 = vadd.f32 1.0, %v1361_v57  ;;  %v1187_v40 = vmul.f32 %v1186_v27, %v1184_v39  ;;  %1893 = vmatpush.msrb.mxu3 %v1866_v34  ;;  %v1442_v57 = vperm.slane %v1440_v32, 0  ;;  %v1862_v27 = vld [vmem:[%s3074_s9 + $0xd0] sm:$0xff] }
 0x2d7   :  { %v1363_v55 = vmul.f32 %v1362_v0, %v1347_v25  ;;  %v1372_v15 = vxor.u32 2147483648, %v1355_v4  ;;  %v1188_v44 = vxor.u32 2147483648, %v1187_v40  ;;  %v1210_v25 = vadd.s32 3, %v1193_v37  ;;  %1894 = vmatpush.msrb.mxu3 %v1865_v54 }
 0x2d9   :  { %v1369_v63 = vxor.u32 2147483648, %v1363_v55  ;;  %v1373_v48 = vsel %vm1371_vm5, %v1372_v15, %v1363_v55  ;;  %v1189_v45 = vsel %vm1068_vm6, %v1188_v44, %v1187_v40  ;;  %v1211_v30 = vand.u32 3, %v1210_v25  ;;  %1895 = vmatpush.msrb.mxu3 %v1864_v43 }
 0x2da   :  { %v1192_v18 = vsel %vm2751_vm9, %v2580_v51, %v1189_v45  ;;  %v1851_v51 = vld [vmem:[%s3074_s9 + $0x78] sm:$0xff]  ;;  %v1845_v45 = vld [vmem:[%s3074_s9 + $0x48] sm:$0xff] }
 0x2db   :  { %v1370_v42 = vsel %vm1368_vm4, %v1355_v4, %v1369_v63  ;;  %v1194_v8 = vmul.f32 %v1192_v18, %v1192_v18  ;;  %vm1213_vm10 = vcmp.eq.s32.totalorder %v1211_v30, 0  ;;  %vm1216_vm11 = vcmp.eq.s32.totalorder %v1211_v30, 2  ;;  %1872 = vmatpush.msrb.mxu2 %v1851_v51  ;;  %v1863_v4 = vld [vmem:[%s3074_s9 + $0xd8] sm:$0xff]  ;;  %v1846_v63 = vld [vmem:[%s3074_s9 + $0x50] sm:$0xff] }
 0x2dc   :  { %v1374_v46 = vsel %vm1367_vm7, %v1370_v42, %v1373_v48  ;;  %vm1212_vm12 = vcmp.lt.s32.totalorder %v1211_v30, 2  ;;  %1896 = vmatpush.msrb.mxu3 %v1863_v4  ;;  %v1861_v42 = vld [vmem:[%s3074_s9 + $0xc8] sm:$0xff] }
 0x2dd   :  { %v1375_v49 = vsel %vm1364_vm8, nan, %v1374_v46  ;;  %v1195_v1 = vmul.f32 -0.001358992, %v1194_v8  ;;  %v1202_v53 = vmul.f32 -0.00019511016, %v1194_v8  ;;  %1873 = vmatpush.msrb.mxu2 %v1850_v38  ;;  %v1855_v38 = vld [vmem:[%s3074_s9 + $0x98] sm:$0xff] }
 0x2de   :  { %1482 = vmatmul.f32.vlgmr.msra.gmra.mxu3 %v1375_v49  ;;  %1522 = vmatmul.f32.vlgmr.msrb.gmra.mxu1 %v1375_v49  ;;  %v1860_v49 = vld [vmem:[%s3074_s9 + $0xc0] sm:$0xff] }
 0x2df   :  { %v1196_v17 = vadd.f32 0.041655596, %v1195_v1  ;;  %v1203_v60 = vadd.f32 0.008332121, %v1202_v53  ;;  %1874 = vmatpush.msrb.mxu2 %v1849_v23  ;;  %1897 = vmatpush.msrb.mxu3 %v1862_v27  ;;  %v1844_v1 = vld [vmem:[%s3074_s9 + $0x40] sm:$0xff]  ;;  %v1859_v53 = vld [vmem:[%s3074_s9 + $0xb8] sm:$0xff] }
 0x2e1   :  { %v1197_v52 = vmul.f32 %v1196_v17, %v1194_v8  ;;  %v1204_v62 = vmul.f32 %v1203_v60, %v1194_v8  ;;  %1875 = vmatpush.msrb.mxu2 %v1848_v12  ;;  %1898 = vmatpush.msrb.mxu3 %v1861_v42  ;;  %v1843_v60 = vld [vmem:[%s3074_s9 + $0x38] sm:$0xff] }
 0x2e3   :  { %v1198_v56 = vadd.f32 -0.4999988, %v1197_v52  ;;  %v1205_v16 = vadd.f32 -0.16666654, %v1204_v62  ;;  %1876 = vmatpush.msrb.mxu2 %v1847_v3  ;;  %1899 = vmatpush.msrb.mxu3 %v1860_v49  ;;  %v1858_v62 = vld [vmem:[%s3074_s9 + $0xb0] sm:$0xff] }
 0x2e5   :  { %v1199_v10 = vmul.f32 %v1198_v56, %v1194_v8  ;;  %v1206_v6 = vmul.f32 %v1205_v16, %v1194_v8  ;;  %1877 = vmatpush.msrb.mxu2 %v1846_v63  ;;  %1900 = vmatpush.msrb.mxu3 %v1859_v53 }
 0x2e7   :  { %v1200_v9 = vadd.f32 1.0, %v1199_v10  ;;  %v1207_v36 = vadd.f32 1.0, %v1206_v6  ;;  %1878 = vmatpush.msrb.mxu2 %v1845_v45  ;;  %v1842_v10 = vld [vmem:[%s3074_s9 + $0x30] sm:$0xff]  ;;  %v1857_v6 = vld [vmem:[%s3074_s9 + $0xa8] sm:$0xff]  ;;  %1901 = vmatpush.msrb.mxu3 %v1858_v62 }
 0x2e9   :  { %v1208_v24 = vmul.f32 %v1207_v36, %v1192_v18  ;;  %v1217_v26 = vxor.u32 2147483648, %v1200_v9  ;;  %1879 = vmatpush.msrb.mxu2 %v1844_v1  ;;  %1902 = vmatpush.msrb.mxu3 %v1857_v6  ;;  %v1852_v1 = vld [vmem:[%s3074_s9 + $0x80] sm:$0xff] }
 0x2eb   :  { %v1214_v13 = vxor.u32 2147483648, %v1208_v24  ;;  %v1218_v20 = vsel %vm1216_vm11, %v1217_v26, %v1208_v24  ;;  %1880 = vmatpush.msrb.mxu2 %v1843_v60  ;;  %v1841_v24 = vld [vmem:[%s3074_s9 + $0x28] sm:$0xff] }
 0x2ed   :  { %v1215_v35 = vsel %vm1213_vm10, %v1200_v9, %v1214_v13  ;;  %1881 = vmatpush.msrb.mxu2 %v1842_v10 }
 0x2ee   :  { %v1219_v47 = vsel %vm1212_vm12, %v1215_v35, %v1218_v20 }
 0x2ef   :  { %v1220_v11 = vsel %vm1209_vm13, nan, %v1219_v47  ;;  %v1856_v47 = vld [vmem:[%s3074_s9 + $0xa0] sm:$0xff]  ;;  %1882 = vmatpush.msrb.mxu2 %v1841_v24 }
 0x2f0   :  { %1462 = vmatmul.f32.vlgmr.msra.gmra.mxu2 %v1220_v11  ;;  %1502 = vmatmul.f32.vlgmr.msrb.gmra.mxu0 %v1220_v11 }
 0x2f1   :  { %1903 = vmatpush.msrb.mxu3 %v1856_v47  ;;  %1883 = vmatpush.msrb.mxu2 %v1840_v61 }
 0x2f3   :  { %1904 = vmatpush.msrb.mxu3 %v1855_v38 }
 0x35b   :  { %v1523_v2 = vpop.f32.mrf.mxu1 }
 0x361   :  { %v1483_v44 = vpop.f32.mrf.mxu3 }
 0x36d   :  { %v1503_v14 = vpop.f32.mrf.mxu0 }
 0x36e   :  { %v1504_v33 = vadd.f32 %v1503_v14, %v1443_v21 }
 0x370   :  { %v2791_v19 = vadd.f32 %v1523_v2, %v1504_v33 }
 0x372   :  { %v1684_v0 = vand.u32 2139095040, %v2791_v19  ;;  %v1681_v55 = vand.u32 2147483647, %v2791_v19 }
 0x373   :  { %v1463_v39 = vpop.f32.mrf.mxu2 }
 0x374   :  { %v1685_v15 = vshrl.u32 %v1684_v0, 23  ;;  %v1464_v40 = vadd.f32 %v1463_v39, %v1442_v57  ;;  %v1688_v48 = vand.u32 8388607, %v1681_v55  ;;  %v1839_v57 = vld [vmem:[%s3074_s9 + $0x18] sm:$0xff]  ;;  %v1854_v0 = vld [vmem:[%s3074_s9 + $0x90] sm:$0xff] }
 0x375   :  { %1884 = vmatpush.msrb.mxu2 %v1839_v57  ;;  %1905 = vmatpush.msrb.mxu3 %v1854_v0 }
 0x376   :  { %v1945_v46 = vadd.s32 4294967169, %v1685_v15  ;;  %v2815_v7 = vadd.f32 %v1483_v44, %v1464_v40  ;;  %v1689_v29 = vor.u32 8388608, %v1688_v48  ;;  %v1853_v48 = vld [vmem:[%s3074_s9 + $0x88] sm:$0xff] }
 0x377   :  { %1906 = vmatpush.msrb.mxu3 %v1853_v48 }
 0x378   :  { %v1691_v18 = vadd.s32 1, %v1945_v46  ;;  %v1529_v8 = vand.u32 2139095040, %v2815_v7  ;;  %v1526_v5 = vand.u32 2147483647, %v2815_v7  ;;  %v2834_v37 = vshll.u32 %v1689_v29, 8 }
 0x379   :  { %1907 = vmatpush.msrb.mxu3 %v1852_v1 }
 0x37a   :  { %vm1692_vm14 = vcmp.gt.s32.totalorder %v1691_v18, 0  ;;  %v1530_v17 = vshrl.u32 %v1529_v8, 23  ;;  %v2849_v9 = vand.u32 8388607, %v1526_v5  ;;  %v2856_v26 = vand.u32 65535, %v2834_v37 }
 0x37b   :  { %v1693_v52 = vsel %vm1692_vm14, %v1691_v18, 0  ;;  %v2859_v13 = vshrl.u32 %v2834_v37, 16 }
 0x37c   :  { %v2839_v56 = vshrl.u32 %v1693_v52, 5  ;;  %v1695_v16 = vand.u32 31, %v1693_v52  ;;  %v1942_v25 = vadd.s32 4294967169, %v1530_v17 }
 0x37e   :  { %v1696_v36 = vsub.s32 32, %v1695_v16  ;;  %v1707_v30 = vshll.u32 %v2042_v22, %v1695_v16  ;;  %v1710_v35 = vshll.u32 %v2043_v28, %v1695_v16  ;;  %vm1716_vm15 = vcmp.lt.s32.totalorder %v2839_v56, 4 }
 0x37f   :  { %v1536_v20 = vadd.s32 1, %v1942_v25  ;;  %v1698_v11 = vshll.u32 %v2045_v41, %v1695_v16  ;;  %v1701_v51 = vshll.u32 %v2046_v50, %v1695_v16  ;;  %v1704_v54 = vshll.u32 %v2047_v58, %v1695_v16 }
 0x380   :  { %v1708_v32 = vshrl.u32 %v2043_v28, %v1696_v36  ;;  %v1711_v21 = vshrl.u32 %v2044_v31, %v1696_v36  ;;  %v1699_v34 = vshrl.u32 %v2046_v50, %v1696_v36  ;;  %v1702_v14 = vshrl.u32 %v2047_v58, %v1696_v36 }
 0x381   :  { %vm1537_vm0 = vcmp.gt.s32.totalorder %v1536_v20, 0  ;;  %v1705_v33 = vshrl.u32 %v2042_v22, %v1696_v36  ;;  %v1697_v3 = vshrl.u32 %v2045_v41, %v1696_v36  ;;  %vm1713_vm1 = vcmp.lt.s32.totalorder %v2839_v56, 1 }
 0x382   :  { %v1709_v23 = vor.u32 %v1708_v32, %v1707_v30  ;;  %v1712_v2 = vor.u32 %v1711_v21, %v1710_v35  ;;  %v1538_v43 = vsel %vm1537_vm0, %v1536_v20, 0  ;;  %v1700_v12 = vor.u32 %v1699_v34, %v1698_v11 }
 0x383   :  { %v2883_v4 = vand.u32 31, %v1538_v43  ;;  %v1703_v39 = vor.u32 %v1702_v14, %v1701_v51  ;;  %v1706_v27 = vor.u32 %v1705_v33, %v1704_v54  ;;  %v2893_v63 = vshrl.u32 %v1538_v43, 5 }
 0x384   :  { %v1722_v15 = vsel %vm1716_vm15, %v1709_v23, 920167782  ;;  %v1726_v40 = vsel %vm1716_vm15, %v1712_v2, 1326507024  ;;  %vm1714_vm2 = vcmp.lt.s32.totalorder %v2839_v56, 2  ;;  %vm1715_vm3 = vcmp.lt.s32.totalorder %v2839_v56, 3 }
 0x385   :  { %v2897_v44 = vsub.s32 32, %v2883_v4  ;;  %v1552_v42 = vshll.u32 %v2042_v22, %v2883_v4  ;;  %v1555_v46 = vshll.u32 %v2043_v28, %v2883_v4  ;;  %v1718_v45 = vsel %vm1716_vm15, %v1706_v27, 2102212464 }
 0x386   :  { %v1721_v49 = vsel %vm1713_vm1, %v1700_v12, %v1703_v39  ;;  %v1723_v29 = vsel %vm1715_vm3, %v1706_v27, %v1722_v15  ;;  %v1717_v53 = vsel %vm1713_vm1, %v1697_v3, %v1700_v12  ;;  %v1719_v60 = vsel %vm1715_vm3, %v1703_v39, %v1718_v45 }
 0x387   :  { %v1553_v18 = vshrl.u32 %v2043_v28, %v2897_v44  ;;  %v1556_v8 = vshrl.u32 %v2044_v31, %v2897_v44  ;;  %v1724_v17 = vsel %vm1714_vm2, %v1721_v49, %v1723_v29  ;;  %v1725_v52 = vsel %vm1713_vm1, %v1703_v39, %v1706_v27 }
 0x388   :  { %v1727_v62 = vsel %vm1715_vm3, %v1709_v23, %v1726_v40  ;;  %v1754_v28 = vand.u32 65535, %v1724_v17  ;;  %v1755_v10 = vshrl.u32 %v1724_v17, 16  ;;  %vm1561_vm4 = vcmp.lt.s32.totalorder %v2893_v63, 4 }
 0x389   :  { %v1554_v16 = vor.u32 %v1553_v18, %v1552_v42  ;;  %v1557_v25 = vor.u32 %v1556_v8, %v1555_v46  ;;  %v1728_v31 = vsel %vm1714_vm2, %v1725_v52, %v1727_v62  ;;  %v2931_v24 = vsel %vm1714_vm2, %v1717_v53, %v1719_v60 }
 0x38a   :  { %v1732_v6 = vand.u32 65535, %v1728_v31  ;;  %v1733_v36 = vshrl.u32 %v1728_v31, 16  ;;  %v1758_v30 = vmul.u32 %v1754_v28, %v2859_v13  ;;  %v1757_v35 = vmul.u32 %v1755_v10, %v2856_v26 }
 0x38b   :  { %v1534_v20 = vor.u32 8388608, %v2849_v9  ;;  %v1567_v47 = vsel %vm1561_vm4, %v1554_v16, 920167782  ;;  %v1756_v21 = vmul.u32 %v1754_v28, %v2856_v26  ;;  %v1571_v61 = vsel %vm1561_vm4, %v1557_v25, 1326507024 }
 0x38c   :  { %v1735_v11 = vmul.u32 %v1733_v36, %v2856_v26  ;;  %v1736_v32 = vmul.u32 %v1732_v6, %v2859_v13  ;;  %v1734_v56 = vmul.u32 %v1732_v6, %v2856_v26  ;;  %v1759_v34 = vmul.u32 %v1755_v10, %v2859_v13 }
 0x38d   :  { %v1760_v51 = vshll.u32 %v1757_v35, 16  ;;  %v1737_v38 = vmul.u32 %v1733_v36, %v2859_v13  ;;  %v1761_v14 = vshrl.u32 %v1757_v35, 16  ;;  %v1762_v54 = vshll.u32 %v1758_v30, 16 }
 0x38e   :  { %v1738_v9 = vshll.u32 %v1735_v11, 16  ;;  %v1739_v33 = vshrl.u32 %v1735_v11, 16  ;;  %v1763_v23 = vshrl.u32 %v1758_v30, 16  ;;  %v1740_v43 = vshll.u32 %v1736_v32, 16 }
 0x38f   :  { %vm1764_vm5 = vc.u32 %v1756_v21, %v1760_v51  ;;  %v1766_v2 = vadd.s32 %v1760_v51, %v1756_v21  ;;  %v1543_v3 = vshll.u32 %v2045_v41, %v2883_v4  ;;  %v1544_v27 = vshrl.u32 %v2046_v50, %v2897_v44 }
 0x390   :  { %vm1742_vm6 = vc.u32 %v1734_v56, %v1738_v9  ;;  %v1744_v57 = vadd.s32 %v1738_v9, %v1734_v56  ;;  %v1765_v12 = vsel %vm1764_vm5, 1, %v2048_v59  ;;  %v1546_v42 = vshll.u32 %v2046_v50, %v2883_v4 }
 0x391   :  { %v1743_v0 = vsel %vm1742_vm6, 1, %v2048_v59  ;;  %v1767_v26 = vadd.s32 %v1765_v12, %v1759_v34  ;;  %vm1768_vm7 = vc.u32 %v1766_v2, %v1762_v54  ;;  %v1547_v48 = vshrl.u32 %v2047_v58, %v2897_v44 }
 0x392   :  { %v1745_v13 = vadd.s32 %v1743_v0, %v1737_v38  ;;  %vm1746_vm8 = vc.u32 %v1744_v57, %v1740_v43  ;;  %v1769_v39 = vsel %vm1768_vm7, 1, %v2048_v59  ;;  %v2957_v45 = vor.u32 %v1544_v27, %v1543_v3 }
 0x393   :  { %v1747_v15 = vsel %vm1746_vm8, 1, %v2048_v59  ;;  %v1771_v40 = vadd.s32 %v1769_v39, %v1767_v26  ;;  %v1549_v49 = vshll.u32 %v2047_v58, %v2883_v4  ;;  %v1550_v29 = vshrl.u32 %v2042_v22, %v2897_v44 }
 0x394   :  { %v1749_v46 = vadd.s32 %v1747_v15, %v1745_v13  ;;  %v1741_v18 = vshrl.u32 %v1736_v32, 16  ;;  %v2963_v8 = vadd.s32 %v1766_v2, %v1762_v54  ;;  %v2965_v53 = vor.u32 %v1547_v48, %v1546_v42 }
 0x395   :  { %v1772_v1 = vadd.s32 %v1771_v40, %v1761_v14  ;;  %v1551_v50 = vor.u32 %v1550_v29, %v1549_v49  ;;  %vm1558_vm9 = vcmp.lt.s32.totalorder %v2893_v63, 1  ;;  %vm1560_vm10 = vcmp.lt.s32.totalorder %v2893_v63, 3 }
 0x396   :  { %v1750_v17 = vadd.s32 %v1749_v46, %v1739_v33  ;;  %v1566_v58 = vsel %vm1558_vm9, %v2957_v45, %v2965_v53  ;;  %v1572_v22 = vsel %vm1560_vm10, %v1554_v16, %v1571_v61  ;;  %v2975_v4 = vshll.u32 %v1534_v20, 8 }
 0x397   :  { %v1773_v60 = vadd.s32 %v1772_v1, %v1763_v23  ;;  %vm1559_vm11 = vcmp.lt.s32.totalorder %v2893_v63, 2  ;;  %v1568_v62 = vsel %vm1560_vm10, %v1551_v50, %v1567_v47  ;;  %v1570_v28 = vsel %vm1558_vm9, %v2965_v53, %v1551_v50 }
 0x398   :  { %v2977_v52 = vadd.s32 %v1750_v17, %v1741_v18  ;;  %v1569_v31 = vsel %vm1559_vm11, %v1566_v58, %v1568_v62  ;;  %v1573_v16 = vsel %vm1559_vm11, %v1570_v28, %v1572_v22  ;;  %v1774_v10 = vmul.u32 %v2834_v37, %v2931_v24 }
 0x399   :  { %v1777_v25 = vadd.s32 1, %v1773_v60  ;;  %v1575_v6 = vand.u32 65535, %v2975_v4  ;;  %v1576_v30 = vshrl.u32 %v2975_v4, 16  ;;  %v1577_v35 = vand.u32 65535, %v1573_v16 }
 0x39a   :  { %vm1776_vm12 = vc.u32 %v2977_v52, %v2963_v8  ;;  %v1578_v20 = vshrl.u32 %v1573_v16, 16  ;;  %v1599_v11 = vand.u32 65535, %v1569_v31  ;;  %v1600_v32 = vshrl.u32 %v1569_v31, 16 }
 0x39b   :  { %v1778_v36 = vsel %vm1776_vm12, %v1777_v25, %v1773_v60  ;;  %v1581_v61 = vmul.u32 %v1577_v35, %v1576_v30  ;;  %v1579_v38 = vmul.u32 %v1577_v35, %v1575_v6  ;;  %v1563_v15 = vsel %vm1561_vm4, %v1551_v50, 2102212464 }
 0x39c   :  { %v1779_v47 = vadd.s32 %v1778_v36, %v1774_v10  ;;  %v1580_v21 = vmul.u32 %v1578_v20, %v1575_v6  ;;  %v1602_v34 = vmul.u32 %v1600_v32, %v1575_v6  ;;  %v1603_v51 = vmul.u32 %v1599_v11, %v1576_v30 }
 0x39d   :  { %v1582_v9 = vmul.u32 %v1578_v20, %v1576_v30  ;;  %v1601_v14 = vmul.u32 %v1599_v11, %v1575_v6  ;;  %v1585_v33 = vshll.u32 %v1581_v61, 16  ;;  %v1604_v2 = vmul.u32 %v1600_v32, %v1576_v30 }
 0x39e   :  { %v1780_v56 = vadd.s32 536870912, %v1779_v47  ;;  %v1583_v37 = vshll.u32 %v1580_v21, 16  ;;  %v1605_v54 = vshll.u32 %v1602_v34, 16  ;;  %v1607_v12 = vshll.u32 %v1603_v51, 16 }
 0x39f   :  { %v1584_v40 = vshrl.u32 %v1580_v21, 16  ;;  %v1542_v46 = vshrl.u32 %v2045_v41, %v2897_v44  ;;  %v1586_v29 = vshrl.u32 %v1581_v61, 16  ;;  %v1606_v1 = vshrl.u32 %v1602_v34, 16  ;;  %v1838_v61 = vld [vmem:[%s3074_s9 + $0x10] sm:$0xff] }
 0x3a0   :  { %v2995_v24 = vshrl.u32 %v1780_v56, 30  ;;  %vm1587_vm13 = vc.u32 %v1579_v38, %v1583_v37  ;;  %v1589_v23 = vadd.s32 %v1583_v37, %v1579_v38  ;;  %vm1609_vm14 = vc.u32 %v1601_v14, %v1605_v54  ;;  %1885 = vmatpush.msrb.mxu2 %v1838_v61 }
 0x3a1   :  { %v1588_v57 = vsel %vm1587_vm13, 1, %v2048_v59  ;;  %v1610_v26 = vsel %vm1609_vm14, 1, %v2048_v59  ;;  %v1611_v3 = vadd.s32 %v1605_v54, %v1601_v14  ;;  %v1562_v58 = vsel %vm1558_vm9, %v1542_v46, %v2957_v45 }
 0x3a2   :  { %v1782_v43 = vshll.u32 %v2995_v24, 30  ;;  %v1590_v0 = vadd.s32 %v1588_v57, %v1582_v9  ;;  %vm1591_vm15 = vc.u32 %v1589_v23, %v1585_v33  ;;  %v1612_v27 = vadd.s32 %v1610_v26, %v1604_v2 }
 0x3a3   :  { %v1592_v39 = vsel %vm1591_vm15, 1, %v2048_v59  ;;  %vm1613_vm0 = vc.u32 %v1611_v3, %v1607_v12  ;;  %v1564_v50 = vsel %vm1560_vm10, %v2965_v53, %v1563_v15  ;;  %v1608_v28 = vshrl.u32 %v1603_v51, 16 }
 0x3a4   :  { %v1783_v13 = vsub.s32 %v1779_v47, %v1782_v43  ;;  %v1594_v42 = vadd.s32 %v1592_v39, %v1590_v0  ;;  %v1614_v49 = vsel %vm1613_vm0, 1, %v2048_v59  ;;  %v1615_v41 = vadd.s32 %v1611_v3, %v1607_v12 }
 0x3a5   :  { %v1616_v17 = vadd.s32 %v1614_v49, %v1612_v27  ;;  %v1565_v59 = vsel %vm1559_vm11, %v1562_v58, %v1564_v50  ;;  %v1775_v6 = vadd.s32 %v2963_v8, %v2977_v52  ;;  %v1836_v52 = vld [vmem:[%s3074_s9] sm:$0xff]  ;;  %vm1683_vm5 = vcmp.lt.s32.totalorder %v2791_v19, 0 }
 0x3a6   :  { %vm1784_vm1 = vcmp.lt.s32.totalorder %v1783_v13, 0  ;;  %v1785_v48 = vsub.s32 0, %v1783_v13  ;;  %v1595_v18 = vadd.s32 %v1594_v42, %v1584_v40  ;;  %v1619_v45 = vmul.u32 %v2975_v4, %v1565_v59  ;;  %v1837_v4 = vld [vmem:[%s3074_s9 + $0x8] sm:$0xff] }
 0x3a7   :  { %v1617_v25 = vadd.s32 %v1616_v17, %v1606_v1  ;;  %1886 = vmatpush.msrb.mxu2 %v1837_v4  ;;  %vm3032_vm6 = vcmp.le.f32.partialorder %v1681_v55, 0.7853982  ;;  %v1805_v57 = vsub.s32 4, %v2995_v24  ;;  %vm1528_vm10 = vcmp.lt.s32.totalorder %v2815_v7, 0 }
 0x3a8   :  { %v1786_v60 = vsel %vm1784_vm1, %v1785_v48, %v1783_v13  ;;  %v1596_v62 = vadd.s32 %v1595_v18, %v1586_v29  ;;  %vm1824_vm12 = vweird.f32 %v2791_v19  ;;  %vm3047_vm13 = vcmp.le.f32.partialorder %v1526_v5, 0.7853982 }
 0x3a9   :  { %v1787_v22 = vclz %v1786_v60  ;;  %v1618_v31 = vadd.s32 %v1617_v25, %v1608_v28  ;;  %1887 = vmatpush.msrb.mxu2 %v1836_v52  ;;  %v1806_v39 = vsel %vm1683_vm5, %v1805_v57, %v2995_v24  ;;  %vm1669_vm1 = vweird.f32 %v2815_v7 }
 0x3aa   :  { %vm1621_vm2 = vc.u32 %v1596_v62, %v1615_v41  ;;  %v1620_v40 = vadd.s32 %v1615_v41, %v1596_v62  ;;  %v1808_v46 = vsel %vm3032_vm6, 0, %v1806_v39  ;;  %v1960_v39 = vld [vmem:[%s3075_s10] ss:$0 sm:$0xff] }
 0x3ab   :  { %v1946_v44 = vadd.s32 4294967294, %v1787_v22  ;;  %v1622_v16 = vadd.s32 1, %v1618_v31  ;;  %v1825_v50 = vadd.s32 3, %v1808_v46 }
 0x3ad   :  { %vm1947_vm3 = vcmp.lt.s32.totalorder %v1946_v44, 0  ;;  %v1623_v30 = vsel %vm1621_vm2, %v1622_v16, %v1618_v31  ;;  %v1826_v41 = vand.u32 3, %v1825_v50  ;;  %vm1912_vm2 = vcmask 15360  }
 0x3ae   :  { %v1790_v10 = vsel %vm1947_vm3, 0, %v1946_v44  ;;  %v1624_v35 = vadd.s32 %v1623_v30, %v1619_v45 }
 0x3af   :  { %v1791_v53 = vsub.s32 32, %v1790_v10  ;;  %v1795_v36 = vsub.s32 4294967266, %v1790_v10  ;;  %v1792_v20 = vshll.u32 %v1783_v13, %v1790_v10  ;;  %vm1828_vm8 = vcmp.eq.s32.totalorder %v1826_v41, 0 }
 0x3b0   :  { %v1625_v32 = vadd.s32 536870912, %v1624_v35  ;;  %vm1831_vm9 = vcmp.eq.s32.totalorder %v1826_v41, 2  ;;  %vm1827_vm11 = vcmp.lt.s32.totalorder %v1826_v41, 2 }
 0x3b1   :  { %v1793_v47 = vshrl.u32 %v1775_v6, %v1791_v53  ;;  %v1796_v11 = vadd.s32 127, %v1795_v36 }
 0x3b2   :  { %v3023_v56 = vshrl.u32 %v1625_v32, 30 }
 0x3b3   :  { %v1794_v63 = vor.u32 %v1793_v47, %v1792_v20  ;;  %v1797_v21 = vshll.u32 %v1796_v11, 23 }
 0x3b4   :  { %v1627_v34 = vshll.u32 %v3023_v56, 30 }
 0x3b5   :  { %v1798_v8 = vor.u32 4788187, %v1797_v21  ;;  %v1801_v38 = vcvt.s32.f32 %v1794_v63  ;;  %v1650_v63 = vsub.s32 4, %v3023_v56 }
 0x3b6   :  { %v1628_v37 = vsub.s32 %v1624_v35, %v1627_v34 }
 0x3b7   :  { %v1799_v51 = vand.u32 2147483647, %v1798_v8 }
 0x3b8   :  { %vm1629_vm4 = vcmp.lt.s32.totalorder %v1628_v37, 0  ;;  %v1630_v14 = vsub.s32 0, %v1628_v37 }
 0x3b9   :  { %v1802_v9 = vmul.f32 %v1801_v38, %v1799_v51 }
 0x3ba   :  { %v1631_v33 = vsel %vm1629_vm4, %v1630_v14, %v1628_v37 }
 0x3bb   :  { %v1803_v54 = vxor.u32 2147483648, %v1802_v9  ;;  %v1632_v43 = vclz %v1631_v33 }
 0x3bd   :  { %v1804_v2 = vsel %vm1683_vm5, %v1803_v54, %v1802_v9  ;;  %v1943_v26 = vadd.s32 4294967294, %v1632_v43 }
 0x3be   :  { %v1807_v12 = vsel %vm3032_vm6, %v2791_v19, %v1804_v2  ;;  %v1651_v19 = vsel %vm1528_vm10, %v1650_v63, %v3023_v56 }
 0x3bf   :  { %v1809_v0 = vmul.f32 %v1807_v12, %v1807_v12  ;;  %vm1944_vm7 = vcmp.lt.s32.totalorder %v1943_v26, 0  ;;  %v1653_v5 = vsel %vm3047_vm13, 0, %v1651_v19 }
 0x3c0   :  { %v1635_v27 = vsel %vm1944_vm7, 0, %v1943_v26  ;;  %v1670_v14 = vadd.s32 3, %v1653_v5 }
 0x3c1   :  { %v1810_v3 = vmul.f32 -0.001358992, %v1809_v0  ;;  %v1817_v13 = vmul.f32 -0.00019511016, %v1809_v0  ;;  %v1636_v42 = vsub.s32 32, %v1635_v27  ;;  %v1640_v48 = vsub.s32 4294967266, %v1635_v27 }
 0x3c2   :  { %v1637_v1 = vshll.u32 %v1628_v37, %v1635_v27  ;;  %v1671_v43 = vand.u32 3, %v1670_v14 }
 0x3c3   :  { %v1811_v55 = vadd.f32 0.041655596, %v1810_v3  ;;  %v1818_v15 = vadd.f32 0.008332121, %v1817_v13  ;;  %v1638_v18 = vshrl.u32 %v1620_v40, %v1636_v42  ;;  %v1641_v17 = vadd.s32 127, %v1640_v48 }
 0x3c4   :  { %vm1673_vm14 = vcmp.eq.s32.totalorder %v1671_v43, 0  ;;  %vm1676_vm15 = vcmp.eq.s32.totalorder %v1671_v43, 2  ;;  %vm1672_vm0 = vcmp.lt.s32.totalorder %v1671_v43, 2 }
 0x3c5   :  { %v1812_v49 = vmul.f32 %v1811_v55, %v1809_v0  ;;  %v1819_v29 = vmul.f32 %v1818_v15, %v1809_v0  ;;  %v1639_v22 = vor.u32 %v1638_v18, %v1637_v1  ;;  %v1642_v28 = vshll.u32 %v1641_v17, 23 }
 0x3c7   :  { %v1813_v60 = vadd.f32 -0.4999988, %v1812_v49  ;;  %v1820_v58 = vadd.f32 -0.16666654, %v1819_v29  ;;  %v1643_v44 = vor.u32 4788187, %v1642_v28  ;;  %v1646_v16 = vcvt.s32.f32 %v1639_v22 }
 0x3c9   :  { %v1814_v24 = vmul.f32 %v1813_v60, %v1809_v0  ;;  %v1821_v25 = vmul.f32 %v1820_v58, %v1809_v0  ;;  %v1644_v31 = vand.u32 2147483647, %v1643_v44 }
 0x3cb   :  { %v1815_v59 = vadd.f32 1.0, %v1814_v24  ;;  %v1822_v62 = vadd.f32 1.0, %v1821_v25  ;;  %v1647_v6 = vmul.f32 %v1646_v16, %v1644_v31 }
 0x3cd   :  { %v1823_v10 = vmul.f32 %v1822_v62, %v1807_v12  ;;  %v1832_v45 = vxor.u32 2147483648, %v1815_v59  ;;  %v1648_v36 = vxor.u32 2147483648, %v1647_v6 }
 0x3cf   :  { %v1829_v53 = vxor.u32 2147483648, %v1823_v10  ;;  %v1833_v35 = vsel %vm1831_vm9, %v1832_v45, %v1823_v10  ;;  %v1649_v11 = vsel %vm1528_vm10, %v1648_v36, %v1647_v6 }
 0x3d0   :  { %v1652_v21 = vsel %vm3047_vm13, %v2815_v7, %v1649_v11 }
 0x3d1   :  { %v1830_v30 = vsel %vm1828_vm8, %v1815_v59, %v1829_v53  ;;  %v1654_v61 = vmul.f32 %v1652_v21, %v1652_v21 }
 0x3d2   :  { %v1834_v20 = vsel %vm1827_vm11, %v1830_v30, %v1833_v35 }
 0x3d3   :  { %v1835_v32 = vsel %vm1824_vm12, nan, %v1834_v20  ;;  %v1655_v4 = vmul.f32 -0.001358992, %v1654_v61  ;;  %v1662_v8 = vmul.f32 -0.00019511016, %v1654_v61 }
 0x3d4   :  { %1908 = vmatmul.f32.vlgmr.msrb.gmra.mxu3 %v1835_v32 }
 0x3d5   :  { %v1656_v52 = vadd.f32 0.041655596, %v1655_v4  ;;  %v1663_v34 = vadd.f32 0.008332121, %v1662_v8 }
 0x3d7   :  { %v1657_v51 = vmul.f32 %v1656_v52, %v1654_v61  ;;  %v1664_v38 = vmul.f32 %v1663_v34, %v1654_v61 }
 0x3d9   :  { %v1658_v37 = vadd.f32 -0.4999988, %v1657_v51  ;;  %v1665_v9 = vadd.f32 -0.16666654, %v1664_v38 }
 0x3db   :  { %v1659_v54 = vmul.f32 %v1658_v37, %v1654_v61  ;;  %v1666_v33 = vmul.f32 %v1665_v9, %v1654_v61 }
 0x3dd   :  { %v1660_v23 = vadd.f32 1.0, %v1659_v54  ;;  %v1667_v2 = vadd.f32 1.0, %v1666_v33 }
 0x3df   :  { %v1668_v57 = vmul.f32 %v1667_v2, %v1652_v21  ;;  %v1677_v12 = vxor.u32 2147483648, %v1660_v23 }
 0x3e1   :  { %v1674_v0 = vxor.u32 2147483648, %v1668_v57  ;;  %v1678_v26 = vsel %vm1676_vm15, %v1677_v12, %v1668_v57 }
 0x3e3   :  { %v1675_v56 = vsel %vm1673_vm14, %v1660_v23, %v1674_v0 }
 0x3e4   :  { %v1679_v3 = vsel %vm1672_vm0, %v1675_v56, %v1678_v26 }
 0x3e5   :  { %v1680_v13 = vsel %vm1669_vm1, nan, %v1679_v3 }
 0x3e6   :  { %1888 = vmatmul.f32.vlgmr.msrb.gmra.mxu2 %v1680_v13 }
 0x457   :  { %v1909_v15 = vpop.f32.mrf.mxu3 }
 0x469   :  { %v1889_v27 = vpop.f32.mrf.mxu2 }
 0x46a   :  { %v1890_v55 = vadd.f32 %v1960_v39, %v1889_v27 }
 0x46c   :  { %v1910_v40 = vadd.f32 %v1909_v15, %v1890_v55 }
 0x46e   :  { %1913 = vst.msk [vmem:[%s3076_s11] sm:$0xff] %vm1912_vm2, %v1910_v40 }
 0x46f   :  { %1918 = vsyncpa [#allocation3], 1 }
 0x470   :  { %1919 = vsyncpa [#allocation5], 1 }

</bundles_post_ra>
